<compile_context>
chip_gen: v6e
topology: v6e:2x2x1
jax: 0.10.0
libtpu: 0.0.40
codegen_flags: <defaults>
</compile_context>

<pallas_src>
import numpy as np
import jax
import jax.numpy as jnp
from jax import lax
from jax.experimental import pallas as pl
from jax.experimental.pallas import tpu as pltpu

_EPS = 1e-5
_VMEM = pl.BlockSpec(memory_space=pltpu.MemorySpace.VMEM)


# --------------------------- fused forward builder -------------------------- #

def make_actor_forward(batch, img_h, img_w, in_ch, conv_k, n_filters,
                       dense, n_actions):
    # Static layer geometry: three valid (stride-1, pad-0) convs.
    layer_dims = []
    hi, wi, ci = img_h, img_w, in_ch
    for _ in range(3):
        ho, wo = hi - conv_k + 1, wi - conv_k + 1
        layer_dims.append((hi, wi, ci, ho, wo, n_filters))
        hi, wi, ci = ho, wo, n_filters
    h3, w3, c3 = hi, wi, ci

    # Batch "slab": all samples stacked with a fixed per-sample pitch of img_h
    # rows, so sample n always starts at row n*img_h.  Each valid conv shrinks
    # the slab by (conv_k-1) rows; rows with (r % img_h) >= h_out are garbage.
    slab_rows = [batch * img_h - (li + 1) * (conv_k - 1) for li in range(3)]
    fc_rows = slab_rows[2] - (h3 - 1)           # slab rows after the fc "conv"
    assert (batch - 1) * img_h + 1 <= fc_rows

    def kernel(x_ref, w1_ref, w2_ref, w3_ref, s_ref, st_ref, gb_ref,
               fcw_ref, fcb_ref, ow_ref, ob_ref, o_ref):
        w_refs = (w1_ref, w2_ref, w3_ref)
        acts = x_ref[...]                       # (batch*img_h, img_w*in_ch) f32
        s_off = 0
        for li, (h_in, w_in, c_in, h_out, w_out, c_out) in enumerate(layer_dims):
            wc = w_out * c_out
            rows_out = slab_rows[li]

            # ---- conv: conv_k shifted MXU matmuls over the whole batch slab ----
            blk = None
            for di in range(conv_k):
                op = acts[di:di + rows_out, :].astype(jnp.bfloat16)
                part = jnp.dot(op, w_refs[li][di],
                               preferred_element_type=jnp.float32)
                blk = part if blk is None else blk + part     # (rows_out, wc) f32

            # ---- BatchNorm2d (training-mode batch stats, biased var), 1 pass ----
            ridx = lax.broadcasted_iota(jnp.int32, (rows_out, 1), 0)
            maskf = (jnp.remainder(ridx, img_h) < h_out).astype(jnp.float32)
            blkm = blk * maskf                                # zero garbage rows
            stats = jnp.concatenate(
                [jnp.sum(blkm, axis=0, keepdims=True),
                 jnp.sum(blkm * blk, axis=0, keepdims=True)], axis=0)  # (2, wc)
            count = float(batch * h_out * w_out)
            ch = jnp.dot(stats, s_ref[s_off:s_off + wc, :],
                         preferred_element_type=jnp.float32) / count   # (2, c_out)
            mean = ch[0:1, :]
            var = ch[1:2, :] - mean * mean
            gamma = gb_ref[2 * li:2 * li + 1, :]
            beta = gb_ref[2 * li + 1:2 * li + 2, :]
            scale = gamma * lax.rsqrt(var + _EPS)             # (1, c_out)
            shift = beta - mean * scale                       # (1, c_out)
            ss = jnp.concatenate([scale, shift], axis=0)      # (2, c_out)
            ss_full = jnp.dot(ss, st_ref[:, s_off:s_off + wc],
                              preferred_element_type=jnp.float32)      # (2, wc)
            acts = jnp.maximum(blk * ss_full[0:1, :] + ss_full[1:2, :], 0.0)
            s_off += wc

        # ---- flatten (NCHW order folded into fcw) -> fc -> ReLU -> output ----
        p = None
        for hh in range(h3):
            op = acts[hh:hh + fc_rows, :].astype(jnp.bfloat16)   # (fc_rows, w3*c3)
            part = jnp.dot(op, fcw_ref[hh], preferred_element_type=jnp.float32)
            p = part if p is None else p + part                  # (fc_rows, dense)
        hid = jnp.concatenate(
            [p[n * img_h:n * img_h + 1, :] for n in range(batch)], axis=0)
        hid = jnp.maximum(hid + fcb_ref[...], 0.0).astype(jnp.bfloat16)
        out = jnp.dot(hid, ow_ref[...],
                      preferred_element_type=jnp.float32) + ob_ref[...]
        o_ref[...] = out.astype(o_ref.dtype)                     # single store

    # rough advisory cost estimate
    flops = 0
    for li, (_hi, _wi, _ci, _ho, _wo, _co) in enumerate(layer_dims):
        flops += 2 * conv_k * slab_rows[li] * (_wi * _ci) * (_wo * _co)
        flops += 8 * (_wo * _co) * _co                 # BN fold/broadcast matmuls
        flops += 8 * slab_rows[li] * (_wo * _co)       # BN elementwise + ReLU
    flops += 2 * h3 * fc_rows * (w3 * c3) * dense
    flops += 2 * batch * dense * n_actions

    def fwd(kp, x_nchw):
        # single tiny layout op outside the kernel: NCHW -> batch-stacked slab
        x2d = jnp.transpose(x_nchw, (0, 2, 3, 1)).reshape(batch * img_h,
                                                          img_w * in_ch)
        args = [x2d, kp["w1"], kp["w2"], kp["w3"], kp["s"], kp["st"], kp["gb"],
                kp["fcw"], kp["fcb"], kp["ow"], kp["ob"]]
        bytes_accessed = sum(int(a.size) * a.dtype.itemsize for a in args)
        bytes_accessed += batch * n_actions * 4
        return pl.pallas_call(
            kernel,
            out_shape=jax.ShapeDtypeStruct((batch, n_actions), jnp.float32),
            in_specs=[_VMEM] * len(args),
            out_specs=_VMEM,
            cost_estimate=pl.CostEstimate(flops=int(flops),
                                          transcendentals=3 * n_filters,
                                          bytes_accessed=int(bytes_accessed)),
        )(*args)

    return jax.jit(fwd)


# ------------------------------ parameter setup ----------------------------- #

def init_params(key, num_conv_layers, conv_kernel_size, input_channels,
                output_action, dense_layer, flatten_size):
    """Torch-equivalent init.  Conv weights stored HWIO; fc_w rows in NCHW order."""
    k = conv_kernel_size
    ks = jax.random.split(key, 10)
    params = {}
    cins = [input_channels, num_conv_layers, num_conv_layers]
    for li in range(3):
        cin, cout = cins[li], num_conv_layers
        fan = k * k * cout                       # normal(0, sqrt(2 / (k*k*out)))
        w = jax.random.normal(ks[2 * li], (cout, cin, k, k), jnp.float32) \
            * np.sqrt(2.0 / fan)
        bound = 1.0 / np.sqrt(cin * k * k)
        b = jax.random.uniform(ks[2 * li + 1], (cout,), jnp.float32, -bound, bound)
        params[f"conv{li + 1}_w"] = jnp.transpose(w, (2, 3, 1, 0))   # HWIO
        params[f"conv{li + 1}_b"] = b.reshape(1, cout)
        params[f"bn{li + 1}_gamma"] = jnp.ones((1, cout), jnp.float32)
        params[f"bn{li + 1}_beta"] = jnp.zeros((1, cout), jnp.float32)
    bnd1 = 1.0 / np.sqrt(flatten_size)
    params["fc_w"] = jax.random.uniform(ks[6], (flatten_size, dense_layer),
                                        jnp.float32, -bnd1, bnd1)
    params["fc_b"] = jax.random.uniform(ks[7], (1, dense_layer),
                                        jnp.float32, -bnd1, bnd1)
    bnd2 = 1.0 / np.sqrt(dense_layer)
    params["out_w"] = jax.random.uniform(ks[8], (dense_layer, output_action),
                                         jnp.float32, -bnd2, bnd2)
    params["out_b"] = jax.random.uniform(ks[9], (1, output_action),
                                         jnp.float32, -bnd2, bnd2)
    return params


def prepare_kernel_params(params, img_h, img_w, in_ch, conv_k, n_filters):
    """One-time host-side repack: block-Toeplitz conv weights (bf16), packed
    gamma/beta, packed channel-fold selection matrices, and the NCHW flatten
    folded into fc_w (bf16).  Conv bias is dropped: training-mode BN cancels it."""
    kp = {}
    hi, wi, ci = img_h, img_w, in_ch
    sel_rows, selt_cols, gb_rows = [], [], []
    for li in range(1, 4):
        ho, wo = hi - conv_k + 1, wi - conv_k + 1
        co = n_filters
        w_hwio = np.asarray(params[f"conv{li}_w"])          # (k, k, ci, co)
        big = np.zeros((conv_k, wi * ci, wo * co), np.float32)
        for di in range(conv_k):
            for dj in range(conv_k):
                for wp in range(wo):
                    big[di,
                        (wp + dj) * ci:(wp + dj + 1) * ci,
                        wp * co:(wp + 1) * co] = w_hwio[di, dj]
        kp[f"w{li}"] = jnp.asarray(big, dtype=jnp.bfloat16)
        gb_rows.append(np.asarray(params[f"bn{li}_gamma"], np.float32))
        gb_rows.append(np.asarray(params[f"bn{li}_beta"], np.float32))
        sel = np.tile(np.eye(co, dtype=np.float32), (wo, 1))          # (wo*co, co)
        sel_rows.append(sel)
        selt_cols.append(np.ascontiguousarray(sel.T))                 # (co, wo*co)
        hi, wi, ci = ho, wo, co
    kp["s"] = jnp.asarray(np.concatenate(sel_rows, axis=0))           # (sum, co)
    kp["st"] = jnp.asarray(np.concatenate(selt_cols, axis=1))         # (co, sum)
    kp["gb"] = jnp.asarray(np.concatenate(gb_rows, axis=0))           # (6, co)
    h3, w3, c3 = hi, wi, ci
    dense = params["fc_w"].shape[1]
    fc = np.asarray(params["fc_w"])                          # rows in (c, h, w) order
    fc_perm = fc.reshape(c3, h3, w3, dense).transpose(1, 2, 0, 3)     # (h, w, c, d)
    kp["fcw"] = jnp.asarray(fc_perm.reshape(h3, w3 * c3, dense),
                            dtype=jnp.bfloat16)
    kp["fcb"] = params["fc_b"]
    kp["ow"] = jnp.asarray(params["out_w"], dtype=jnp.bfloat16)
    kp["ob"] = params["out_b"]
    return kp


# ------------------------------ plain-JAX reference ------------------------- #

def reference_forward(params, x_nchw):
    x = jnp.transpose(x_nchw, (0, 2, 3, 1))
    for li in range(1, 4):
        w = params[f"conv{li}_w"]                            # HWIO
        cout = w.shape[-1]
        y = lax.conv_general_dilated(x, w, (1, 1), "VALID",
                                     dimension_numbers=("NHWC", "HWIO", "NHWC"))
        y = y + params[f"conv{li}_b"].reshape(1, 1, 1, cout)
        mean = jnp.mean(y, axis=(0, 1, 2), keepdims=True)
        var = jnp.mean(jnp.square(y - mean), axis=(0, 1, 2), keepdims=True)
        y = (y - mean) / jnp.sqrt(var + _EPS)
        y = y * params[f"bn{li}_gamma"].reshape(1, 1, 1, cout) \
            + params[f"bn{li}_beta"].reshape(1, 1, 1, cout)
        x = jnp.maximum(y, 0.0)
    x_flat = jnp.transpose(x, (0, 3, 1, 2)).reshape(x.shape[0], -1)   # NCHW flatten
    h = jnp.maximum(x_flat @ params["fc_w"] + params["fc_b"], 0.0)
    return h @ params["out_w"] + params["out_b"]


# ----------------------------------- main ------------------------------------ #

if __name__ == "__main__":
    BATCH = 2
    INPUT_CHANNELS = 3
    NUM_CONV_LAYERS = 8          # out_channels of each conv
    CONV_KERNEL_SIZE = 3
    IMG_HEIGHT = IMG_WIDTH = 16
    DENSE_LAYER = 32
    OUTPUT_ACTION = 4

    # three valid 3x3 convs: 16 -> 14 -> 12 -> 10
    h = IMG_HEIGHT
    for _ in range(3):
        h = h - CONV_KERNEL_SIZE + 1
    FLATTEN = NUM_CONV_LAYERS * h * h            # 8 * 10 * 10 = 800

    key = jax.random.PRNGKey(0)
    k_param, k_x = jax.random.split(key)
    params = init_params(k_param, NUM_CONV_LAYERS, CONV_KERNEL_SIZE,
                         INPUT_CHANNELS, OUTPUT_ACTION, DENSE_LAYER, FLATTEN)
    kparams = prepare_kernel_params(params, IMG_HEIGHT, IMG_WIDTH,
                                    INPUT_CHANNELS, CONV_KERNEL_SIZE,
                                    NUM_CONV_LAYERS)

    actor_forward = make_actor_forward(BATCH, IMG_HEIGHT, IMG_WIDTH,
                                       INPUT_CHANNELS, CONV_KERNEL_SIZE,
                                       NUM_CONV_LAYERS, DENSE_LAYER,
                                       OUTPUT_ACTION)

    x = jax.random.normal(k_x, (BATCH, INPUT_CHANNELS, IMG_HEIGHT, IMG_WIDTH),
                          jnp.float32)

    out = actor_forward(kparams, x)
    out = jax.block_until_ready(out)
    assert out.shape == (BATCH, OUTPUT_ACTION)

    ref = reference_forward(params, x)
    np.testing.assert_allclose(np.asarray(out), np.asarray(ref),
                               rtol=2e-2, atol=2e-2)

    print("KERNEL_OK")
</pallas_src>

<mosaic_0001>
module attributes {stable_mosaic.version = 11 : i64} {
  func.func @kernel(%arg0: memref<32x48xf32, #tpu.memory_space<vmem>>, %arg1: memref<3x48x112xbf16, #tpu.memory_space<vmem>>, %arg2: memref<3x112x96xbf16, #tpu.memory_space<vmem>>, %arg3: memref<3x96x80xbf16, #tpu.memory_space<vmem>>, %arg4: memref<288x8xf32, #tpu.memory_space<vmem>>, %arg5: memref<8x288xf32, #tpu.memory_space<vmem>>, %arg6: memref<6x8xf32, #tpu.memory_space<vmem>>, %arg7: memref<10x80x32xbf16, #tpu.memory_space<vmem>>, %arg8: memref<1x32xf32, #tpu.memory_space<vmem>>, %arg9: memref<32x4xbf16, #tpu.memory_space<vmem>>, %arg10: memref<1x4xf32, #tpu.memory_space<vmem>>, %arg11: memref<2x4xf32, #tpu.memory_space<vmem>>) attributes {dimension_semantics = [], scalar_prefetch = 0 : i64, scratch_operands = 0 : i64, tpu.core_type = #tpu.core_type<tc>} {
    %c0 = arith.constant 0 : index
    %c0_0 = arith.constant 0 : index
    %0 = vector.load %arg0[%c0, %c0_0] : memref<32x48xf32, #tpu.memory_space<vmem>>, vector<32x48xf32>
    %1 = vector.extract_strided_slice %0 {offsets = [0, 0], sizes = [30, 48], strides = [1, 1]} : vector<32x48xf32> to vector<30x48xf32>
    %2 = arith.truncf %1 : vector<30x48xf32> to vector<30x48xbf16>
    %c0_1 = arith.constant 0 : index
    %c0_2 = arith.constant 0 : index
    %c0_3 = arith.constant 0 : index
    %3 = vector.load %arg1[%c0_1, %c0_2, %c0_3] : memref<3x48x112xbf16, #tpu.memory_space<vmem>>, vector<1x48x112xbf16>
    %4 = vector.shape_cast %3 : vector<1x48x112xbf16> to vector<48x112xbf16>
    %cst = arith.constant dense<0.000000e+00> : vector<30x112xf32>
    %5 = tpu.matmul %2, %4, %cst {dimension_numbers = #tpu.dot_dimension_numbers<[1], [0], [0], [1], [0, 0, 1, 1], [], []>} : vector<30x48xbf16>, vector<48x112xbf16>, vector<30x112xf32> -> vector<30x112xf32>
    %6 = vector.extract_strided_slice %0 {offsets = [1, 0], sizes = [30, 48], strides = [1, 1]} : vector<32x48xf32> to vector<30x48xf32>
    %7 = arith.truncf %6 : vector<30x48xf32> to vector<30x48xbf16>
    %c1 = arith.constant 1 : index
    %c0_4 = arith.constant 0 : index
    %c0_5 = arith.constant 0 : index
    %8 = vector.load %arg1[%c1, %c0_4, %c0_5] : memref<3x48x112xbf16, #tpu.memory_space<vmem>>, vector<1x48x112xbf16>
    %9 = vector.shape_cast %8 : vector<1x48x112xbf16> to vector<48x112xbf16>
    %cst_6 = arith.constant dense<0.000000e+00> : vector<30x112xf32>
    %10 = tpu.matmul %7, %9, %cst_6 {dimension_numbers = #tpu.dot_dimension_numbers<[1], [0], [0], [1], [0, 0, 1, 1], [], []>} : vector<30x48xbf16>, vector<48x112xbf16>, vector<30x112xf32> -> vector<30x112xf32>
    %11 = arith.addf %5, %10 : vector<30x112xf32>
    %12 = vector.extract_strided_slice %0 {offsets = [2, 0], sizes = [30, 48], strides = [1, 1]} : vector<32x48xf32> to vector<30x48xf32>
    %13 = arith.truncf %12 : vector<30x48xf32> to vector<30x48xbf16>
    %c2 = arith.constant 2 : index
    %c0_7 = arith.constant 0 : index
    %c0_8 = arith.constant 0 : index
    %14 = vector.load %arg1[%c2, %c0_7, %c0_8] : memref<3x48x112xbf16, #tpu.memory_space<vmem>>, vector<1x48x112xbf16>
    %15 = vector.shape_cast %14 : vector<1x48x112xbf16> to vector<48x112xbf16>
    %cst_9 = arith.constant dense<0.000000e+00> : vector<30x112xf32>
    %16 = tpu.matmul %13, %15, %cst_9 {dimension_numbers = #tpu.dot_dimension_numbers<[1], [0], [0], [1], [0, 0, 1, 1], [], []>} : vector<30x48xbf16>, vector<48x112xbf16>, vector<30x112xf32> -> vector<30x112xf32>
    %17 = arith.addf %11, %16 : vector<30x112xf32>
    %18 = tpu.iota {dimensions = array<i32: 0>} : vector<30x1xi32>
    %c16_i32 = arith.constant 16 : i32
    %c0_i32 = arith.constant 0 : i32
    %19 = arith.cmpi eq, %c16_i32, %c0_i32 : i32
    %c1_i32 = arith.constant 1 : i32
    %20 = arith.select %19, %c1_i32, %c16_i32 : i32
    %21 = vector.broadcast %20 : i32 to vector<30x1xi32>
    %22 = arith.remsi %18, %21 : vector<30x1xi32>
    %c0_i32_10 = arith.constant 0 : i32
    %23 = vector.broadcast %c0_i32_10 : i32 to vector<30x1xi32>
    %24 = arith.cmpi ne, %22, %23 : vector<30x1xi32>
    %c0_i32_11 = arith.constant 0 : i32
    %25 = vector.broadcast %c0_i32_11 : i32 to vector<30x1xi32>
    %26 = arith.cmpi slt, %22, %25 : vector<30x1xi32>
    %c0_i32_12 = arith.constant 0 : i32
    %27 = arith.cmpi slt, %20, %c0_i32_12 : i32
    %28 = vector.broadcast %27 : i1 to vector<30x1xi1>
    %29 = vector.broadcast %28 : vector<30x1xi1> to vector<30x1xi1>
    %30 = arith.xori %26, %29 : vector<30x1xi1>
    %31 = arith.andi %30, %24 : vector<30x1xi1>
    %32 = vector.broadcast %20 : i32 to vector<30x1xi32>
    %33 = arith.addi %22, %32 : vector<30x1xi32>
    %34 = arith.select %31, %33, %22 : vector<30x1xi1>, vector<30x1xi32>
    %c14_i32 = arith.constant 14 : i32
    %35 = vector.broadcast %c14_i32 : i32 to vector<30x1xi32>
    %36 = arith.cmpi slt, %34, %35 : vector<30x1xi32>
    %37 = arith.extui %36 : vector<30x1xi1> to vector<30x1xi32>
    %38 = arith.sitofp %37 : vector<30x1xi32> to vector<30x1xf32>
    %39 = vector.broadcast %38 : vector<30x1xf32> to vector<30x112xf32>
    %40 = arith.mulf %17, %39 : vector<30x112xf32>
    %cst_13 = arith.constant dense<0.000000e+00> : vector<112xf32>
    %41 = vector.multi_reduction <add>, %40, %cst_13 [0] : vector<30x112xf32> to vector<112xf32>
    %42 = vector.shape_cast %41 : vector<112xf32> to vector<1x112xf32>
    %43 = arith.mulf %40, %17 : vector<30x112xf32>
    %cst_14 = arith.constant dense<0.000000e+00> : vector<112xf32>
    %44 = vector.multi_reduction <add>, %43, %cst_14 [0] : vector<30x112xf32> to vector<112xf32>
    %45 = vector.shape_cast %44 : vector<112xf32> to vector<1x112xf32>
    %46 = tpu.concatenate %42, %45 in 0 : vector<1x112xf32>, vector<1x112xf32> -> vector<2x112xf32>
    %c0_15 = arith.constant 0 : index
    %c0_16 = arith.constant 0 : index
    %47 = vector.load %arg4[%c0_15, %c0_16] : memref<288x8xf32, #tpu.memory_space<vmem>>, vector<112x8xf32>
    %cst_17 = arith.constant dense<0.000000e+00> : vector<2x8xf32>
    %48 = tpu.matmul %46, %47, %cst_17 {dimension_numbers = #tpu.dot_dimension_numbers<[1], [0], [0], [1], [0, 0, 1, 1], [], []>} : vector<2x112xf32>, vector<112x8xf32>, vector<2x8xf32> -> vector<2x8xf32>
    %cst_18 = arith.constant 3.920000e+02 : f32
    %49 = vector.broadcast %cst_18 : f32 to vector<2x8xf32>
    %50 = arith.divf %48, %49 : vector<2x8xf32>
    %51 = vector.extract_strided_slice %50 {offsets = [0, 0], sizes = [1, 8], strides = [1, 1]} : vector<2x8xf32> to vector<1x8xf32>
    %52 = vector.extract_strided_slice %50 {offsets = [1, 0], sizes = [1, 8], strides = [1, 1]} : vector<2x8xf32> to vector<1x8xf32>
    %53 = arith.mulf %51, %51 : vector<1x8xf32>
    %54 = arith.subf %52, %53 : vector<1x8xf32>
    %c0_19 = arith.constant 0 : index
    %c0_20 = arith.constant 0 : index
    %55 = vector.load %arg6[%c0_19, %c0_20] : memref<6x8xf32, #tpu.memory_space<vmem>>, vector<1x8xf32>
    %c1_21 = arith.constant 1 : index
    %c0_22 = arith.constant 0 : index
    %56 = vector.load %arg6[%c1_21, %c0_22] : memref<6x8xf32, #tpu.memory_space<vmem>>, vector<1x8xf32>
    %cst_23 = arith.constant 9.99999974E-6 : f32
    %57 = vector.broadcast %cst_23 : f32 to vector<1x8xf32>
    %58 = arith.addf %54, %57 : vector<1x8xf32>
    %59 = math.rsqrt %58 : vector<1x8xf32>
    %60 = arith.mulf %55, %59 : vector<1x8xf32>
    %61 = arith.mulf %51, %60 : vector<1x8xf32>
    %62 = arith.subf %56, %61 : vector<1x8xf32>
    %63 = tpu.concatenate %60, %62 in 0 : vector<1x8xf32>, vector<1x8xf32> -> vector<2x8xf32>
    %c0_24 = arith.constant 0 : index
    %c0_25 = arith.constant 0 : index
    %64 = vector.load %arg5[%c0_24, %c0_25] : memref<8x288xf32, #tpu.memory_space<vmem>>, vector<8x112xf32>
    %cst_26 = arith.constant dense<0.000000e+00> : vector<2x112xf32>
    %65 = tpu.matmul %63, %64, %cst_26 {dimension_numbers = #tpu.dot_dimension_numbers<[1], [0], [0], [1], [0, 0, 1, 1], [], []>} : vector<2x8xf32>, vector<8x112xf32>, vector<2x112xf32> -> vector<2x112xf32>
    %66 = vector.extract_strided_slice %65 {offsets = [0, 0], sizes = [1, 112], strides = [1, 1]} : vector<2x112xf32> to vector<1x112xf32>
    %67 = vector.broadcast %66 : vector<1x112xf32> to vector<30x112xf32>
    %68 = arith.mulf %17, %67 : vector<30x112xf32>
    %69 = vector.extract_strided_slice %65 {offsets = [1, 0], sizes = [1, 112], strides = [1, 1]} : vector<2x112xf32> to vector<1x112xf32>
    %70 = vector.broadcast %69 : vector<1x112xf32> to vector<30x112xf32>
    %71 = arith.addf %68, %70 : vector<30x112xf32>
    %cst_27 = arith.constant 0.000000e+00 : f32
    %72 = vector.broadcast %cst_27 : f32 to vector<30x112xf32>
    %73 = arith.maximumf %71, %72 : vector<30x112xf32>
    %74 = vector.extract_strided_slice %73 {offsets = [0, 0], sizes = [28, 112], strides = [1, 1]} : vector<30x112xf32> to vector<28x112xf32>
    %75 = arith.truncf %74 : vector<28x112xf32> to vector<28x112xbf16>
    %c0_28 = arith.constant 0 : index
    %c0_29 = arith.constant 0 : index
    %c0_30 = arith.constant 0 : index
    %76 = vector.load %arg2[%c0_28, %c0_29, %c0_30] : memref<3x112x96xbf16, #tpu.memory_space<vmem>>, vector<1x112x96xbf16>
    %77 = vector.shape_cast %76 : vector<1x112x96xbf16> to vector<112x96xbf16>
    %cst_31 = arith.constant dense<0.000000e+00> : vector<28x96xf32>
    %78 = tpu.matmul %75, %77, %cst_31 {dimension_numbers = #tpu.dot_dimension_numbers<[1], [0], [0], [1], [0, 0, 1, 1], [], []>} : vector<28x112xbf16>, vector<112x96xbf16>, vector<28x96xf32> -> vector<28x96xf32>
    %79 = vector.extract_strided_slice %73 {offsets = [1, 0], sizes = [28, 112], strides = [1, 1]} : vector<30x112xf32> to vector<28x112xf32>
    %80 = arith.truncf %79 : vector<28x112xf32> to vector<28x112xbf16>
    %c1_32 = arith.constant 1 : index
    %c0_33 = arith.constant 0 : index
    %c0_34 = arith.constant 0 : index
    %81 = vector.load %arg2[%c1_32, %c0_33, %c0_34] : memref<3x112x96xbf16, #tpu.memory_space<vmem>>, vector<1x112x96xbf16>
    %82 = vector.shape_cast %81 : vector<1x112x96xbf16> to vector<112x96xbf16>
    %cst_35 = arith.constant dense<0.000000e+00> : vector<28x96xf32>
    %83 = tpu.matmul %80, %82, %cst_35 {dimension_numbers = #tpu.dot_dimension_numbers<[1], [0], [0], [1], [0, 0, 1, 1], [], []>} : vector<28x112xbf16>, vector<112x96xbf16>, vector<28x96xf32> -> vector<28x96xf32>
    %84 = arith.addf %78, %83 : vector<28x96xf32>
    %85 = vector.extract_strided_slice %73 {offsets = [2, 0], sizes = [28, 112], strides = [1, 1]} : vector<30x112xf32> to vector<28x112xf32>
    %86 = arith.truncf %85 : vector<28x112xf32> to vector<28x112xbf16>
    %c2_36 = arith.constant 2 : index
    %c0_37 = arith.constant 0 : index
    %c0_38 = arith.constant 0 : index
    %87 = vector.load %arg2[%c2_36, %c0_37, %c0_38] : memref<3x112x96xbf16, #tpu.memory_space<vmem>>, vector<1x112x96xbf16>
    %88 = vector.shape_cast %87 : vector<1x112x96xbf16> to vector<112x96xbf16>
    %cst_39 = arith.constant dense<0.000000e+00> : vector<28x96xf32>
    %89 = tpu.matmul %86, %88, %cst_39 {dimension_numbers = #tpu.dot_dimension_numbers<[1], [0], [0], [1], [0, 0, 1, 1], [], []>} : vector<28x112xbf16>, vector<112x96xbf16>, vector<28x96xf32> -> vector<28x96xf32>
    %90 = arith.addf %84, %89 : vector<28x96xf32>
    %91 = tpu.iota {dimensions = array<i32: 0>} : vector<28x1xi32>
    %c16_i32_40 = arith.constant 16 : i32
    %c0_i32_41 = arith.constant 0 : i32
    %92 = arith.cmpi eq, %c16_i32_40, %c0_i32_41 : i32
    %c1_i32_42 = arith.constant 1 : i32
    %93 = arith.select %92, %c1_i32_42, %c16_i32_40 : i32
    %94 = vector.broadcast %93 : i32 to vector<28x1xi32>
    %95 = arith.remsi %91, %94 : vector<28x1xi32>
    %c0_i32_43 = arith.constant 0 : i32
    %96 = vector.broadcast %c0_i32_43 : i32 to vector<28x1xi32>
    %97 = arith.cmpi ne, %95, %96 : vector<28x1xi32>
    %c0_i32_44 = arith.constant 0 : i32
    %98 = vector.broadcast %c0_i32_44 : i32 to vector<28x1xi32>
    %99 = arith.cmpi slt, %95, %98 : vector<28x1xi32>
    %c0_i32_45 = arith.constant 0 : i32
    %100 = arith.cmpi slt, %93, %c0_i32_45 : i32
    %101 = vector.broadcast %100 : i1 to vector<28x1xi1>
    %102 = vector.broadcast %101 : vector<28x1xi1> to vector<28x1xi1>
    %103 = arith.xori %99, %102 : vector<28x1xi1>
    %104 = arith.andi %103, %97 : vector<28x1xi1>
    %105 = vector.broadcast %93 : i32 to vector<28x1xi32>
    %106 = arith.addi %95, %105 : vector<28x1xi32>
    %107 = arith.select %104, %106, %95 : vector<28x1xi1>, vector<28x1xi32>
    %c12_i32 = arith.constant 12 : i32
    %108 = vector.broadcast %c12_i32 : i32 to vector<28x1xi32>
    %109 = arith.cmpi slt, %107, %108 : vector<28x1xi32>
    %110 = arith.extui %109 : vector<28x1xi1> to vector<28x1xi32>
    %111 = arith.sitofp %110 : vector<28x1xi32> to vector<28x1xf32>
    %112 = vector.broadcast %111 : vector<28x1xf32> to vector<28x96xf32>
    %113 = arith.mulf %90, %112 : vector<28x96xf32>
    %cst_46 = arith.constant dense<0.000000e+00> : vector<96xf32>
    %114 = vector.multi_reduction <add>, %113, %cst_46 [0] : vector<28x96xf32> to vector<96xf32>
    %115 = vector.shape_cast %114 : vector<96xf32> to vector<1x96xf32>
    %116 = arith.mulf %113, %90 : vector<28x96xf32>
    %cst_47 = arith.constant dense<0.000000e+00> : vector<96xf32>
    %117 = vector.multi_reduction <add>, %116, %cst_47 [0] : vector<28x96xf32> to vector<96xf32>
    %118 = vector.shape_cast %117 : vector<96xf32> to vector<1x96xf32>
    %119 = tpu.concatenate %115, %118 in 0 : vector<1x96xf32>, vector<1x96xf32> -> vector<2x96xf32>
    %c112 = arith.constant 112 : index
    %c0_48 = arith.constant 0 : index
    %120 = vector.load %arg4[%c112, %c0_48] : memref<288x8xf32, #tpu.memory_space<vmem>>, vector<96x8xf32>
    %cst_49 = arith.constant dense<0.000000e+00> : vector<2x8xf32>
    %121 = tpu.matmul %119, %120, %cst_49 {dimension_numbers = #tpu.dot_dimension_numbers<[1], [0], [0], [1], [0, 0, 1, 1], [], []>} : vector<2x96xf32>, vector<96x8xf32>, vector<2x8xf32> -> vector<2x8xf32>
    %cst_50 = arith.constant 2.880000e+02 : f32
    %122 = vector.broadcast %cst_50 : f32 to vector<2x8xf32>
    %123 = arith.divf %121, %122 : vector<2x8xf32>
    %124 = vector.extract_strided_slice %123 {offsets = [0, 0], sizes = [1, 8], strides = [1, 1]} : vector<2x8xf32> to vector<1x8xf32>
    %125 = vector.extract_strided_slice %123 {offsets = [1, 0], sizes = [1, 8], strides = [1, 1]} : vector<2x8xf32> to vector<1x8xf32>
    %126 = arith.mulf %124, %124 : vector<1x8xf32>
    %127 = arith.subf %125, %126 : vector<1x8xf32>
    %c2_51 = arith.constant 2 : index
    %c0_52 = arith.constant 0 : index
    %128 = vector.load %arg6[%c2_51, %c0_52] : memref<6x8xf32, #tpu.memory_space<vmem>>, vector<1x8xf32>
    %c3 = arith.constant 3 : index
    %c0_53 = arith.constant 0 : index
    %129 = vector.load %arg6[%c3, %c0_53] : memref<6x8xf32, #tpu.memory_space<vmem>>, vector<1x8xf32>
    %cst_54 = arith.constant 9.99999974E-6 : f32
    %130 = vector.broadcast %cst_54 : f32 to vector<1x8xf32>
    %131 = arith.addf %127, %130 : vector<1x8xf32>
    %132 = math.rsqrt %131 : vector<1x8xf32>
    %133 = arith.mulf %128, %132 : vector<1x8xf32>
    %134 = arith.mulf %124, %133 : vector<1x8xf32>
    %135 = arith.subf %129, %134 : vector<1x8xf32>
    %136 = tpu.concatenate %133, %135 in 0 : vector<1x8xf32>, vector<1x8xf32> -> vector<2x8xf32>
    %c0_55 = arith.constant 0 : index
    %c112_56 = arith.constant 112 : index
    %137 = vector.load %arg5[%c0_55, %c112_56] : memref<8x288xf32, #tpu.memory_space<vmem>>, vector<8x96xf32>
    %cst_57 = arith.constant dense<0.000000e+00> : vector<2x96xf32>
    %138 = tpu.matmul %136, %137, %cst_57 {dimension_numbers = #tpu.dot_dimension_numbers<[1], [0], [0], [1], [0, 0, 1, 1], [], []>} : vector<2x8xf32>, vector<8x96xf32>, vector<2x96xf32> -> vector<2x96xf32>
    %139 = vector.extract_strided_slice %138 {offsets = [0, 0], sizes = [1, 96], strides = [1, 1]} : vector<2x96xf32> to vector<1x96xf32>
    %140 = vector.broadcast %139 : vector<1x96xf32> to vector<28x96xf32>
    %141 = arith.mulf %90, %140 : vector<28x96xf32>
    %142 = vector.extract_strided_slice %138 {offsets = [1, 0], sizes = [1, 96], strides = [1, 1]} : vector<2x96xf32> to vector<1x96xf32>
    %143 = vector.broadcast %142 : vector<1x96xf32> to vector<28x96xf32>
    %144 = arith.addf %141, %143 : vector<28x96xf32>
    %cst_58 = arith.constant 0.000000e+00 : f32
    %145 = vector.broadcast %cst_58 : f32 to vector<28x96xf32>
    %146 = arith.maximumf %144, %145 : vector<28x96xf32>
    %147 = vector.extract_strided_slice %146 {offsets = [0, 0], sizes = [26, 96], strides = [1, 1]} : vector<28x96xf32> to vector<26x96xf32>
    %148 = arith.truncf %147 : vector<26x96xf32> to vector<26x96xbf16>
    %c0_59 = arith.constant 0 : index
    %c0_60 = arith.constant 0 : index
    %c0_61 = arith.constant 0 : index
    %149 = vector.load %arg3[%c0_59, %c0_60, %c0_61] : memref<3x96x80xbf16, #tpu.memory_space<vmem>>, vector<1x96x80xbf16>
    %150 = vector.shape_cast %149 : vector<1x96x80xbf16> to vector<96x80xbf16>
    %cst_62 = arith.constant dense<0.000000e+00> : vector<26x80xf32>
    %151 = tpu.matmul %148, %150, %cst_62 {dimension_numbers = #tpu.dot_dimension_numbers<[1], [0], [0], [1], [0, 0, 1, 1], [], []>} : vector<26x96xbf16>, vector<96x80xbf16>, vector<26x80xf32> -> vector<26x80xf32>
    %152 = vector.extract_strided_slice %146 {offsets = [1, 0], sizes = [26, 96], strides = [1, 1]} : vector<28x96xf32> to vector<26x96xf32>
    %153 = arith.truncf %152 : vector<26x96xf32> to vector<26x96xbf16>
    %c1_63 = arith.constant 1 : index
    %c0_64 = arith.constant 0 : index
    %c0_65 = arith.constant 0 : index
    %154 = vector.load %arg3[%c1_63, %c0_64, %c0_65] : memref<3x96x80xbf16, #tpu.memory_space<vmem>>, vector<1x96x80xbf16>
    %155 = vector.shape_cast %154 : vector<1x96x80xbf16> to vector<96x80xbf16>
    %cst_66 = arith.constant dense<0.000000e+00> : vector<26x80xf32>
    %156 = tpu.matmul %153, %155, %cst_66 {dimension_numbers = #tpu.dot_dimension_numbers<[1], [0], [0], [1], [0, 0, 1, 1], [], []>} : vector<26x96xbf16>, vector<96x80xbf16>, vector<26x80xf32> -> vector<26x80xf32>
    %157 = arith.addf %151, %156 : vector<26x80xf32>
    %158 = vector.extract_strided_slice %146 {offsets = [2, 0], sizes = [26, 96], strides = [1, 1]} : vector<28x96xf32> to vector<26x96xf32>
    %159 = arith.truncf %158 : vector<26x96xf32> to vector<26x96xbf16>
    %c2_67 = arith.constant 2 : index
    %c0_68 = arith.constant 0 : index
    %c0_69 = arith.constant 0 : index
    %160 = vector.load %arg3[%c2_67, %c0_68, %c0_69] : memref<3x96x80xbf16, #tpu.memory_space<vmem>>, vector<1x96x80xbf16>
    %161 = vector.shape_cast %160 : vector<1x96x80xbf16> to vector<96x80xbf16>
    %cst_70 = arith.constant dense<0.000000e+00> : vector<26x80xf32>
    %162 = tpu.matmul %159, %161, %cst_70 {dimension_numbers = #tpu.dot_dimension_numbers<[1], [0], [0], [1], [0, 0, 1, 1], [], []>} : vector<26x96xbf16>, vector<96x80xbf16>, vector<26x80xf32> -> vector<26x80xf32>
    %163 = arith.addf %157, %162 : vector<26x80xf32>
    %164 = tpu.iota {dimensions = array<i32: 0>} : vector<26x1xi32>
    %c16_i32_71 = arith.constant 16 : i32
    %c0_i32_72 = arith.constant 0 : i32
    %165 = arith.cmpi eq, %c16_i32_71, %c0_i32_72 : i32
    %c1_i32_73 = arith.constant 1 : i32
    %166 = arith.select %165, %c1_i32_73, %c16_i32_71 : i32
    %167 = vector.broadcast %166 : i32 to vector<26x1xi32>
    %168 = arith.remsi %164, %167 : vector<26x1xi32>
    %c0_i32_74 = arith.constant 0 : i32
    %169 = vector.broadcast %c0_i32_74 : i32 to vector<26x1xi32>
    %170 = arith.cmpi ne, %168, %169 : vector<26x1xi32>
    %c0_i32_75 = arith.constant 0 : i32
    %171 = vector.broadcast %c0_i32_75 : i32 to vector<26x1xi32>
    %172 = arith.cmpi slt, %168, %171 : vector<26x1xi32>
    %c0_i32_76 = arith.constant 0 : i32
    %173 = arith.cmpi slt, %166, %c0_i32_76 : i32
    %174 = vector.broadcast %173 : i1 to vector<26x1xi1>
    %175 = vector.broadcast %174 : vector<26x1xi1> to vector<26x1xi1>
    %176 = arith.xori %172, %175 : vector<26x1xi1>
    %177 = arith.andi %176, %170 : vector<26x1xi1>
    %178 = vector.broadcast %166 : i32 to vector<26x1xi32>
    %179 = arith.addi %168, %178 : vector<26x1xi32>
    %180 = arith.select %177, %179, %168 : vector<26x1xi1>, vector<26x1xi32>
    %c10_i32 = arith.constant 10 : i32
    %181 = vector.broadcast %c10_i32 : i32 to vector<26x1xi32>
    %182 = arith.cmpi slt, %180, %181 : vector<26x1xi32>
    %183 = arith.extui %182 : vector<26x1xi1> to vector<26x1xi32>
    %184 = arith.sitofp %183 : vector<26x1xi32> to vector<26x1xf32>
    %185 = vector.broadcast %184 : vector<26x1xf32> to vector<26x80xf32>
    %186 = arith.mulf %163, %185 : vector<26x80xf32>
    %cst_77 = arith.constant dense<0.000000e+00> : vector<80xf32>
    %187 = vector.multi_reduction <add>, %186, %cst_77 [0] : vector<26x80xf32> to vector<80xf32>
    %188 = vector.shape_cast %187 : vector<80xf32> to vector<1x80xf32>
    %189 = arith.mulf %186, %163 : vector<26x80xf32>
    %cst_78 = arith.constant dense<0.000000e+00> : vector<80xf32>
    %190 = vector.multi_reduction <add>, %189, %cst_78 [0] : vector<26x80xf32> to vector<80xf32>
    %191 = vector.shape_cast %190 : vector<80xf32> to vector<1x80xf32>
    %192 = tpu.concatenate %188, %191 in 0 : vector<1x80xf32>, vector<1x80xf32> -> vector<2x80xf32>
    %c208 = arith.constant 208 : index
    %c0_79 = arith.constant 0 : index
    %193 = vector.load %arg4[%c208, %c0_79] : memref<288x8xf32, #tpu.memory_space<vmem>>, vector<80x8xf32>
    %cst_80 = arith.constant dense<0.000000e+00> : vector<2x8xf32>
    %194 = tpu.matmul %192, %193, %cst_80 {dimension_numbers = #tpu.dot_dimension_numbers<[1], [0], [0], [1], [0, 0, 1, 1], [], []>} : vector<2x80xf32>, vector<80x8xf32>, vector<2x8xf32> -> vector<2x8xf32>
    %cst_81 = arith.constant 2.000000e+02 : f32
    %195 = vector.broadcast %cst_81 : f32 to vector<2x8xf32>
    %196 = arith.divf %194, %195 : vector<2x8xf32>
    %197 = vector.extract_strided_slice %196 {offsets = [0, 0], sizes = [1, 8], strides = [1, 1]} : vector<2x8xf32> to vector<1x8xf32>
    %198 = vector.extract_strided_slice %196 {offsets = [1, 0], sizes = [1, 8], strides = [1, 1]} : vector<2x8xf32> to vector<1x8xf32>
    %199 = arith.mulf %197, %197 : vector<1x8xf32>
    %200 = arith.subf %198, %199 : vector<1x8xf32>
    %c4 = arith.constant 4 : index
    %c0_82 = arith.constant 0 : index
    %201 = vector.load %arg6[%c4, %c0_82] : memref<6x8xf32, #tpu.memory_space<vmem>>, vector<1x8xf32>
    %c5 = arith.constant 5 : index
    %c0_83 = arith.constant 0 : index
    %202 = vector.load %arg6[%c5, %c0_83] : memref<6x8xf32, #tpu.memory_space<vmem>>, vector<1x8xf32>
    %cst_84 = arith.constant 9.99999974E-6 : f32
    %203 = vector.broadcast %cst_84 : f32 to vector<1x8xf32>
    %204 = arith.addf %200, %203 : vector<1x8xf32>
    %205 = math.rsqrt %204 : vector<1x8xf32>
    %206 = arith.mulf %201, %205 : vector<1x8xf32>
    %207 = arith.mulf %197, %206 : vector<1x8xf32>
    %208 = arith.subf %202, %207 : vector<1x8xf32>
    %209 = tpu.concatenate %206, %208 in 0 : vector<1x8xf32>, vector<1x8xf32> -> vector<2x8xf32>
    %c0_85 = arith.constant 0 : index
    %c208_86 = arith.constant 208 : index
    %210 = vector.load %arg5[%c0_85, %c208_86] : memref<8x288xf32, #tpu.memory_space<vmem>>, vector<8x80xf32>
    %cst_87 = arith.constant dense<0.000000e+00> : vector<2x80xf32>
    %211 = tpu.matmul %209, %210, %cst_87 {dimension_numbers = #tpu.dot_dimension_numbers<[1], [0], [0], [1], [0, 0, 1, 1], [], []>} : vector<2x8xf32>, vector<8x80xf32>, vector<2x80xf32> -> vector<2x80xf32>
    %212 = vector.extract_strided_slice %211 {offsets = [0, 0], sizes = [1, 80], strides = [1, 1]} : vector<2x80xf32> to vector<1x80xf32>
    %213 = vector.broadcast %212 : vector<1x80xf32> to vector<26x80xf32>
    %214 = arith.mulf %163, %213 : vector<26x80xf32>
    %215 = vector.extract_strided_slice %211 {offsets = [1, 0], sizes = [1, 80], strides = [1, 1]} : vector<2x80xf32> to vector<1x80xf32>
    %216 = vector.broadcast %215 : vector<1x80xf32> to vector<26x80xf32>
    %217 = arith.addf %214, %216 : vector<26x80xf32>
    %cst_88 = arith.constant 0.000000e+00 : f32
    %218 = vector.broadcast %cst_88 : f32 to vector<26x80xf32>
    %219 = arith.maximumf %217, %218 : vector<26x80xf32>
    %220 = vector.extract_strided_slice %219 {offsets = [0, 0], sizes = [17, 80], strides = [1, 1]} : vector<26x80xf32> to vector<17x80xf32>
    %221 = arith.truncf %220 : vector<17x80xf32> to vector<17x80xbf16>
    %c0_89 = arith.constant 0 : index
    %c0_90 = arith.constant 0 : index
    %c0_91 = arith.constant 0 : index
    %222 = vector.load %arg7[%c0_89, %c0_90, %c0_91] : memref<10x80x32xbf16, #tpu.memory_space<vmem>>, vector<1x80x32xbf16>
    %223 = vector.shape_cast %222 : vector<1x80x32xbf16> to vector<80x32xbf16>
    %cst_92 = arith.constant dense<0.000000e+00> : vector<17x32xf32>
    %224 = tpu.matmul %221, %223, %cst_92 {dimension_numbers = #tpu.dot_dimension_numbers<[1], [0], [0], [1], [0, 0, 1, 1], [], []>} : vector<17x80xbf16>, vector<80x32xbf16>, vector<17x32xf32> -> vector<17x32xf32>
    %225 = vector.extract_strided_slice %219 {offsets = [1, 0], sizes = [17, 80], strides = [1, 1]} : vector<26x80xf32> to vector<17x80xf32>
    %226 = arith.truncf %225 : vector<17x80xf32> to vector<17x80xbf16>
    %c1_93 = arith.constant 1 : index
    %c0_94 = arith.constant 0 : index
    %c0_95 = arith.constant 0 : index
    %227 = vector.load %arg7[%c1_93, %c0_94, %c0_95] : memref<10x80x32xbf16, #tpu.memory_space<vmem>>, vector<1x80x32xbf16>
    %228 = vector.shape_cast %227 : vector<1x80x32xbf16> to vector<80x32xbf16>
    %cst_96 = arith.constant dense<0.000000e+00> : vector<17x32xf32>
    %229 = tpu.matmul %226, %228, %cst_96 {dimension_numbers = #tpu.dot_dimension_numbers<[1], [0], [0], [1], [0, 0, 1, 1], [], []>} : vector<17x80xbf16>, vector<80x32xbf16>, vector<17x32xf32> -> vector<17x32xf32>
    %230 = arith.addf %224, %229 : vector<17x32xf32>
    %231 = vector.extract_strided_slice %219 {offsets = [2, 0], sizes = [17, 80], strides = [1, 1]} : vector<26x80xf32> to vector<17x80xf32>
    %232 = arith.truncf %231 : vector<17x80xf32> to vector<17x80xbf16>
    %c2_97 = arith.constant 2 : index
    %c0_98 = arith.constant 0 : index
    %c0_99 = arith.constant 0 : index
    %233 = vector.load %arg7[%c2_97, %c0_98, %c0_99] : memref<10x80x32xbf16, #tpu.memory_space<vmem>>, vector<1x80x32xbf16>
    %234 = vector.shape_cast %233 : vector<1x80x32xbf16> to vector<80x32xbf16>
    %cst_100 = arith.constant dense<0.000000e+00> : vector<17x32xf32>
    %235 = tpu.matmul %232, %234, %cst_100 {dimension_numbers = #tpu.dot_dimension_numbers<[1], [0], [0], [1], [0, 0, 1, 1], [], []>} : vector<17x80xbf16>, vector<80x32xbf16>, vector<17x32xf32> -> vector<17x32xf32>
    %236 = arith.addf %230, %235 : vector<17x32xf32>
    %237 = vector.extract_strided_slice %219 {offsets = [3, 0], sizes = [17, 80], strides = [1, 1]} : vector<26x80xf32> to vector<17x80xf32>
    %238 = arith.truncf %237 : vector<17x80xf32> to vector<17x80xbf16>
    %c3_101 = arith.constant 3 : index
    %c0_102 = arith.constant 0 : index
    %c0_103 = arith.constant 0 : index
    %239 = vector.load %arg7[%c3_101, %c0_102, %c0_103] : memref<10x80x32xbf16, #tpu.memory_space<vmem>>, vector<1x80x32xbf16>
    %240 = vector.shape_cast %239 : vector<1x80x32xbf16> to vector<80x32xbf16>
    %cst_104 = arith.constant dense<0.000000e+00> : vector<17x32xf32>
    %241 = tpu.matmul %238, %240, %cst_104 {dimension_numbers = #tpu.dot_dimension_numbers<[1], [0], [0], [1], [0, 0, 1, 1], [], []>} : vector<17x80xbf16>, vector<80x32xbf16>, vector<17x32xf32> -> vector<17x32xf32>
    %242 = arith.addf %236, %241 : vector<17x32xf32>
    %243 = vector.extract_strided_slice %219 {offsets = [4, 0], sizes = [17, 80], strides = [1, 1]} : vector<26x80xf32> to vector<17x80xf32>
    %244 = arith.truncf %243 : vector<17x80xf32> to vector<17x80xbf16>
    %c4_105 = arith.constant 4 : index
    %c0_106 = arith.constant 0 : index
    %c0_107 = arith.constant 0 : index
    %245 = vector.load %arg7[%c4_105, %c0_106, %c0_107] : memref<10x80x32xbf16, #tpu.memory_space<vmem>>, vector<1x80x32xbf16>
    %246 = vector.shape_cast %245 : vector<1x80x32xbf16> to vector<80x32xbf16>
    %cst_108 = arith.constant dense<0.000000e+00> : vector<17x32xf32>
    %247 = tpu.matmul %244, %246, %cst_108 {dimension_numbers = #tpu.dot_dimension_numbers<[1], [0], [0], [1], [0, 0, 1, 1], [], []>} : vector<17x80xbf16>, vector<80x32xbf16>, vector<17x32xf32> -> vector<17x32xf32>
    %248 = arith.addf %242, %247 : vector<17x32xf32>
    %249 = vector.extract_strided_slice %219 {offsets = [5, 0], sizes = [17, 80], strides = [1, 1]} : vector<26x80xf32> to vector<17x80xf32>
    %250 = arith.truncf %249 : vector<17x80xf32> to vector<17x80xbf16>
    %c5_109 = arith.constant 5 : index
    %c0_110 = arith.constant 0 : index
    %c0_111 = arith.constant 0 : index
    %251 = vector.load %arg7[%c5_109, %c0_110, %c0_111] : memref<10x80x32xbf16, #tpu.memory_space<vmem>>, vector<1x80x32xbf16>
    %252 = vector.shape_cast %251 : vector<1x80x32xbf16> to vector<80x32xbf16>
    %cst_112 = arith.constant dense<0.000000e+00> : vector<17x32xf32>
    %253 = tpu.matmul %250, %252, %cst_112 {dimension_numbers = #tpu.dot_dimension_numbers<[1], [0], [0], [1], [0, 0, 1, 1], [], []>} : vector<17x80xbf16>, vector<80x32xbf16>, vector<17x32xf32> -> vector<17x32xf32>
    %254 = arith.addf %248, %253 : vector<17x32xf32>
    %255 = vector.extract_strided_slice %219 {offsets = [6, 0], sizes = [17, 80], strides = [1, 1]} : vector<26x80xf32> to vector<17x80xf32>
    %256 = arith.truncf %255 : vector<17x80xf32> to vector<17x80xbf16>
    %c6 = arith.constant 6 : index
    %c0_113 = arith.constant 0 : index
    %c0_114 = arith.constant 0 : index
    %257 = vector.load %arg7[%c6, %c0_113, %c0_114] : memref<10x80x32xbf16, #tpu.memory_space<vmem>>, vector<1x80x32xbf16>
    %258 = vector.shape_cast %257 : vector<1x80x32xbf16> to vector<80x32xbf16>
    %cst_115 = arith.constant dense<0.000000e+00> : vector<17x32xf32>
    %259 = tpu.matmul %256, %258, %cst_115 {dimension_numbers = #tpu.dot_dimension_numbers<[1], [0], [0], [1], [0, 0, 1, 1], [], []>} : vector<17x80xbf16>, vector<80x32xbf16>, vector<17x32xf32> -> vector<17x32xf32>
    %260 = arith.addf %254, %259 : vector<17x32xf32>
    %261 = vector.extract_strided_slice %219 {offsets = [7, 0], sizes = [17, 80], strides = [1, 1]} : vector<26x80xf32> to vector<17x80xf32>
    %262 = arith.truncf %261 : vector<17x80xf32> to vector<17x80xbf16>
    %c7 = arith.constant 7 : index
    %c0_116 = arith.constant 0 : index
    %c0_117 = arith.constant 0 : index
    %263 = vector.load %arg7[%c7, %c0_116, %c0_117] : memref<10x80x32xbf16, #tpu.memory_space<vmem>>, vector<1x80x32xbf16>
    %264 = vector.shape_cast %263 : vector<1x80x32xbf16> to vector<80x32xbf16>
    %cst_118 = arith.constant dense<0.000000e+00> : vector<17x32xf32>
    %265 = tpu.matmul %262, %264, %cst_118 {dimension_numbers = #tpu.dot_dimension_numbers<[1], [0], [0], [1], [0, 0, 1, 1], [], []>} : vector<17x80xbf16>, vector<80x32xbf16>, vector<17x32xf32> -> vector<17x32xf32>
    %266 = arith.addf %260, %265 : vector<17x32xf32>
    %267 = vector.extract_strided_slice %219 {offsets = [8, 0], sizes = [17, 80], strides = [1, 1]} : vector<26x80xf32> to vector<17x80xf32>
    %268 = arith.truncf %267 : vector<17x80xf32> to vector<17x80xbf16>
    %c8 = arith.constant 8 : index
    %c0_119 = arith.constant 0 : index
    %c0_120 = arith.constant 0 : index
    %269 = vector.load %arg7[%c8, %c0_119, %c0_120] : memref<10x80x32xbf16, #tpu.memory_space<vmem>>, vector<1x80x32xbf16>
    %270 = vector.shape_cast %269 : vector<1x80x32xbf16> to vector<80x32xbf16>
    %cst_121 = arith.constant dense<0.000000e+00> : vector<17x32xf32>
    %271 = tpu.matmul %268, %270, %cst_121 {dimension_numbers = #tpu.dot_dimension_numbers<[1], [0], [0], [1], [0, 0, 1, 1], [], []>} : vector<17x80xbf16>, vector<80x32xbf16>, vector<17x32xf32> -> vector<17x32xf32>
    %272 = arith.addf %266, %271 : vector<17x32xf32>
    %273 = vector.extract_strided_slice %219 {offsets = [9, 0], sizes = [17, 80], strides = [1, 1]} : vector<26x80xf32> to vector<17x80xf32>
    %274 = arith.truncf %273 : vector<17x80xf32> to vector<17x80xbf16>
    %c9 = arith.constant 9 : index
    %c0_122 = arith.constant 0 : index
    %c0_123 = arith.constant 0 : index
    %275 = vector.load %arg7[%c9, %c0_122, %c0_123] : memref<10x80x32xbf16, #tpu.memory_space<vmem>>, vector<1x80x32xbf16>
    %276 = vector.shape_cast %275 : vector<1x80x32xbf16> to vector<80x32xbf16>
    %cst_124 = arith.constant dense<0.000000e+00> : vector<17x32xf32>
    %277 = tpu.matmul %274, %276, %cst_124 {dimension_numbers = #tpu.dot_dimension_numbers<[1], [0], [0], [1], [0, 0, 1, 1], [], []>} : vector<17x80xbf16>, vector<80x32xbf16>, vector<17x32xf32> -> vector<17x32xf32>
    %278 = arith.addf %272, %277 : vector<17x32xf32>
    %279 = vector.extract_strided_slice %278 {offsets = [0, 0], sizes = [1, 32], strides = [1, 1]} : vector<17x32xf32> to vector<1x32xf32>
    %280 = vector.extract_strided_slice %278 {offsets = [16, 0], sizes = [1, 32], strides = [1, 1]} : vector<17x32xf32> to vector<1x32xf32>
    %281 = tpu.concatenate %279, %280 in 0 : vector<1x32xf32>, vector<1x32xf32> -> vector<2x32xf32>
    %c0_125 = arith.constant 0 : index
    %c0_126 = arith.constant 0 : index
    %282 = vector.load %arg8[%c0_125, %c0_126] : memref<1x32xf32, #tpu.memory_space<vmem>>, vector<1x32xf32>
    %283 = vector.broadcast %282 : vector<1x32xf32> to vector<2x32xf32>
    %284 = arith.addf %281, %283 : vector<2x32xf32>
    %cst_127 = arith.constant 0.000000e+00 : f32
    %285 = vector.broadcast %cst_127 : f32 to vector<2x32xf32>
    %286 = arith.maximumf %284, %285 : vector<2x32xf32>
    %287 = arith.truncf %286 : vector<2x32xf32> to vector<2x32xbf16>
    %c0_128 = arith.constant 0 : index
    %c0_129 = arith.constant 0 : index
    %288 = vector.load %arg9[%c0_128, %c0_129] : memref<32x4xbf16, #tpu.memory_space<vmem>>, vector<32x4xbf16>
    %cst_130 = arith.constant dense<0.000000e+00> : vector<2x4xf32>
    %289 = tpu.matmul %287, %288, %cst_130 {dimension_numbers = #tpu.dot_dimension_numbers<[1], [0], [0], [1], [0, 0, 1, 1], [], []>} : vector<2x32xbf16>, vector<32x4xbf16>, vector<2x4xf32> -> vector<2x4xf32>
    %c0_131 = arith.constant 0 : index
    %c0_132 = arith.constant 0 : index
    %290 = vector.load %arg10[%c0_131, %c0_132] : memref<1x4xf32, #tpu.memory_space<vmem>>, vector<1x4xf32>
    %291 = vector.broadcast %290 : vector<1x4xf32> to vector<2x4xf32>
    %292 = arith.addf %289, %291 : vector<2x4xf32>
    %c0_133 = arith.constant 0 : index
    %c0_134 = arith.constant 0 : index
    %293 = vector.load %arg11[%c0_133, %c0_134] : memref<2x4xf32, #tpu.memory_space<vmem>>, vector<2x4xf32>
    tpu.vector_store %arg11[%c0_133, %c0_134], %292 {strides = array<i32>} : memref<2x4xf32, #tpu.memory_space<vmem>>, vector<2x4xf32>,
    return
  }
}

</mosaic_0001>

<bundles_post_ra>
// kernel: fwd.1
= control target key start
LH: loop header
LB: loop body
LE: loop exit
PB: predicated region body
PF: predicated region fallthrough
CT: control target
= control target key end

     0   :  { %vm93_vm0 = vcmask 392192   ;;  %vm59_vm1 = vsmask.f32 7424  ;;  %vm229_vm2 = vcmask 1046528   ;;  %s4775_s0 = inlined_call_operand.vmem [shape: f32[32,48], index: 0, kind: input, shape index: {}]   ;;  %s4776_s1 = inlined_call_operand.vmem [shape: bf16[3,48,112], index: 1, kind: input, shape index: {}]   ;;  %s4777_s2 = inlined_call_operand.vmem [shape: bf16[3,112,96], index: 2, kind: input, shape index: {}]   ;;  %s4778_s3 = inlined_call_operand.vmem [shape: bf16[3,96,80], index: 3, kind: input, shape index: {}]   ;;  %s4779_s4 = inlined_call_operand.vmem [shape: f32[288,8], index: 4, kind: input, shape index: {}]   ;;  %s4780_s5 = inlined_call_operand.vmem [shape: f32[8,288], index: 5, kind: input, shape index: {}]   ;;  %s4781_s6 = inlined_call_operand.vmem [shape: f32[6,8], index: 6, kind: input, shape index: {}]   ;;  %s4782_s7 = inlined_call_operand.vmem [shape: bf16[10,80,32], index: 7, kind: input, shape index: {}]   ;;  %s4783_s8 = inlined_call_operand.vmem [shape: f32[1,32], index: 8, kind: input, shape index: {}]   ;;  %s4784_s9 = inlined_call_operand.vmem [shape: bf16[32,4], index: 9, kind: input, shape index: {}]   ;;  %s4785_s10 = inlined_call_operand.vmem [shape: f32[1,4], index: 10, kind: input, shape index: {}]   ;;  %s4786_s11 = inlined_call_operand.hbm [shape: f32[2,4], index: 11, kind: output, shape index: {}]  }
   0x1   :  { %v3814_v0 = vld [vmem:[%s4776_s1 + $0x28] sm:$0xff]   ;;  %v3815_v1 = vld [vmem:[%s4776_s1 + $0x10] sm:$0xff]   ;;  %v3816_v2 = vld [vmem:[%s4776_s1 + $0x20] sm:$0xff]  }
   0x2   :  { %3433 = vmatprep.subr.bf16.mxu0 %v3814_v0  ;;  %3443 = vmatprep.subr.bf16.mxu1 %v3815_v1  ;;  %v3817_v3 = vld [vmem:[%s4776_s1 + $0x8] sm:$0xff]   ;;  %v3818_v4 = vld [vmem:[%s4776_s1 + $0x18] sm:$0xff]   ;;  %v3819_v5 = vld [vmem:[%s4776_s1] sm:$0xff]  }
   0x3   :  { %3434 = vmatpush3.bf16.msra.mxu0 %v3814_v0  ;;  %3444 = vmatpush3.bf16.msra.mxu1 %v3815_v1  ;;  %v40_v6 = vld [vmem:[%s4775_s0] sm:$0xff]  ;;  %v41_v7 = vld [vmem:[%s4775_s0 + $0x8] sm:$0xff]  ;;  %v42_v8 = vld [vmem:[%s4775_s0 + $0x10] sm:$0xff] }
   0x4   :  { %3435 = vmatprep.subr.bf16.mxu0 %v3816_v2  ;;  %3445 = vmatprep.subr.bf16.mxu1 %v3817_v3  ;;  %v43_v9 = vld [vmem:[%s4775_s0 + $0x18] sm:$0xff]  ;;  %v44_v10 = vpack.c.bf16 %v41_v7, %v40_v6  ;;  %v3820_v12 = vld [vmem:[%s4776_s1 + $0x40] sm:$0xff]   ;;  %v3822_v26 = vld [vmem:[%s4776_s1 + $0x30] sm:$0xff]  }
   0x5   :  { %v45_v11 = vpack.c.bf16 %v43_v9, %v42_v8  ;;  %v3821_v22 = vld [vmem:[%s4776_s1 + $0x38] sm:$0xff]  }
   0x6   :  { %v61_v13 = vshrl.u32 %v44_v10, 16  ;;  %v63_v14 = vshll.u32 %v44_v10, 16  ;;  %3449 = vmatprep.mubr.msk.bf16.mxu1 %vm93_vm0, %v44_v10  ;;  %v230_v17 = vrot.slane %v44_v10, 1 }
   0x7   :  { %3436 = vmatpush3.bf16.msra.mxu0 %v3816_v2  ;;  %3446 = vmatpush3.bf16.msra.mxu1 %v3817_v3  ;;  %v68_v15 = vshll.u32 %v45_v11, 16  ;;  %v72_v16 = vshrl.u32 %v45_v11, 16  ;;  %v231_v19 = vrot.slane %v45_v11, 1 }
   0x8   :  { %3437 = vmatprep.subr.bf16.mxu0 %v3818_v4  ;;  %3447 = vmatprep.subr.bf16.mxu1 %v3819_v5  ;;  %v65_v18 = vrot.slane %v63_v14, 1 }
   0x9   :  { %v70_v20 = vrot.slane %v68_v15, 1  ;;  %v232_v25 = vsel %vm229_vm2, %v230_v17, %v231_v19 }
   0xa   :  { %v66_v21 = vor.u32 %v65_v18, %v61_v13 }
   0xb   :  { %3438 = vmatpush3.bf16.msra.mxu0 %v3818_v4  ;;  %3448 = vmatpush3.bf16.msra.mxu1 %v3819_v5  ;;  %v74_v23 = vor.u32 %v72_v16, %v70_v20 }
   0xc   :  { %3453 = vmatprep.subr.bf16.mxu0 %v3820_v12  ;;  %v71_v24 = vsel %vm59_vm1, %v66_v21, %v70_v20 }
   0xd   :  { %3439 = vmatprep.mubr.msk.bf16.mxu0 %vm93_vm0, %v71_v24 }
   0xe   :  { %3450 = vmatmul.mubr.msk.bf16.vlgmr.msra.gmra.mxu1 %vm93_vm0, %v45_v11  ;;  %3440 = vmatmul.mubr.msk.bf16.vlgmr.msra.gmra.mxu0 %vm93_vm0, %v74_v23 }
   0xf   :  { %3454 = vmatpush3.bf16.msra.mxu0 %v3820_v12  ;;  %3459 = vmatprep.mubr.msk.bf16.mxu0 %vm93_vm0, %v232_v25 }
  0x10   :  { %3455 = vmatprep.subr.bf16.mxu0 %v3821_v22 }
  0x13   :  { %3456 = vmatpush3.bf16.msra.mxu0 %v3821_v22 }
  0x14   :  { %3457 = vmatprep.subr.bf16.mxu0 %v3822_v26 }
  0x17   :  { %3458 = vmatpush3.bf16.msra.mxu0 %v3822_v26 }
  0x1a   :  { %3460 = vmatmul.mubr.msk.bf16.vlgmr.msra.gmra.mxu0 %vm93_vm0, %v231_v19 }
  0x1b   :  { %16 = vsyncpa [#allocation3], 0  ;;  %v3942_v27 = vmov 0.0   ;;  %v426_v28 = vld [vmem:[%s4779_s4 + $0x68] sm:$0xff]  ;;  %v425_v29 = vld [vmem:[%s4779_s4 + $0x60] sm:$0xff]  ;;  %vm3943_vm3 = vmmov 0   ;;  %v310_v42 = vlaneseq }
  0x1c   :  { %3463 = vmatprep.subr.mxu1 %v3942_v27  ;;  %3494 = vmatprep.subr.mxu0 %v3942_v27  ;;  %v424_v30 = vld [vmem:[%s4779_s4 + $0x58] sm:$0xff]  ;;  %v423_v31 = vld [vmem:[%s4779_s4 + $0x50] sm:$0xff]  ;;  %v422_v32 = vld [vmem:[%s4779_s4 + $0x48] sm:$0xff]  ;;  %vm379_vm6 = vcmask 916480   ;;  %vm385_vm7 = vcmask 914432   ;;  %vm411_vm8 = vcmask 1040384  }
  0x1d   :  { %3464 = vmatpush3.msra.mxu1 %v426_v28  ;;  %v421_v33 = vld [vmem:[%s4779_s4 + $0x40] sm:$0xff]  ;;  %v420_v34 = vld [vmem:[%s4779_s4 + $0x38] sm:$0xff]  ;;  %v419_v35 = vld [vmem:[%s4779_s4 + $0x30] sm:$0xff]  ;;  %3491 = vmatprep.mubr.msk.f32.mxu1 %vm3943_vm3, %v3942_v27  ;;  %v4115_v46 = vshrl.u32 %v310_v42, 7  ;;  %vm522_vm9 = vcmask 64512   ;;  %s3944_s18 = smov 16  }
  0x1e   :  { %3465 = vmatprep.subr.mxu1 %v3942_v27  ;;  %v418_v36 = vld [vmem:[%s4779_s4 + $0x28] sm:$0xff]  ;;  %v417_v37 = vld [vmem:[%s4779_s4 + $0x20] sm:$0xff]  ;;  %v416_v38 = vld [vmem:[%s4779_s4 + $0x18] sm:$0xff]  ;;  %3496 = vmatprep.mubr.msk.f32.mxu0 %vm3943_vm3, %v3942_v27  ;;  %vm991_vm12 = vcmask 785408   ;;  %vm997_vm13 = vcmask 781312   ;;  %vm1138_vm14 = vcmask 130048  }
  0x1f   :  { %3466 = vmatpush3.msra.mxu1 %v425_v29  ;;  %v415_v39 = vld [vmem:[%s4779_s4 + $0x10] sm:$0xff]  ;;  %v414_v40 = vld [vmem:[%s4779_s4 + $0x8] sm:$0xff]  ;;  %v413_v41 = vld [vmem:[%s4779_s4] sm:$0xff]  ;;  %v314_v49 = vadd.s32 24, %v4115_v46  ;;  %v312_v50 = vadd.s32 8, %v4115_v46  ;;  %s3945_s14 = smov 48  }
  0x20   :  { %3467 = vmatprep.subr.mxu1 %v3942_v27  ;;  %v3824_v42 = vld [vmem:[%s4777_s2 + $0x28] sm:$0xff]  }
  0x21   :  { %3468 = vmatpush3.msra.mxu1 %v424_v30  ;;  %v4119_v53 = vand.u32 15, %v314_v49  ;;  %v4121_v54 = vand.u32 15, %v312_v50 }
  0x22   :  { %3469 = vmatprep.subr.mxu1 %v3942_v27 }
  0x23   :  { %3470 = vmatpush3.msra.mxu1 %v423_v31  ;;  %vm366_vm4 = vcmp.lt.s32.totalorder %v4119_v53, 14  ;;  %vm364_vm5 = vcmp.lt.s32.totalorder %v4121_v54, 14  ;;  %vm978_vm10 = vcmp.lt.s32.totalorder %v4119_v53, 12  ;;  %vm976_vm11 = vcmp.lt.s32.totalorder %v4121_v54, 12 }
  0x24   :  { %3471 = vmatprep.subr.mxu1 %v3942_v27  ;;  %v2970_v1 = vsel %vm366_vm4, 1.0, %v3942_v27  ;;  %v2969_v3 = vsel %vm364_vm5, 1.0, %v3942_v27  ;;  %vm1572_vm15 = vcmp.lt.s32.totalorder %v4119_v53, 10  ;;  %vm1570_vm4 = vcmp.lt.s32.totalorder %v4121_v54, 10 }
  0x25   :  { %3472 = vmatpush3.msra.mxu1 %v422_v32  ;;  %vm1585_vm5 = vcmask 654336  }
  0x26   :  { %3473 = vmatprep.subr.mxu1 %v3942_v27 }
  0x27   :  { %3474 = vmatpush3.msra.mxu1 %v421_v33 }
  0x28   :  { %3475 = vmatprep.subr.mxu1 %v3942_v27 }
  0x29   :  { %3476 = vmatpush3.msra.mxu1 %v420_v34 }
  0x2a   :  { %3477 = vmatprep.subr.mxu1 %v3942_v27 }
  0x2b   :  { %3478 = vmatpush3.msra.mxu1 %v419_v35 }
  0x2c   :  { %3479 = vmatprep.subr.mxu1 %v3942_v27 }
  0x2d   :  { %3480 = vmatpush3.msra.mxu1 %v418_v36 }
  0x2e   :  { %3481 = vmatprep.subr.mxu1 %v3942_v27 }
  0x2f   :  { %3482 = vmatpush3.msra.mxu1 %v417_v37 }
  0x30   :  { %3483 = vmatprep.subr.mxu1 %v3942_v27 }
  0x31   :  { %3484 = vmatpush3.msra.mxu1 %v416_v38 }
  0x32   :  { %3485 = vmatprep.subr.mxu1 %v3942_v27 }
  0x33   :  { %3486 = vmatpush3.msra.mxu1 %v415_v39 }
  0x34   :  { %3487 = vmatprep.subr.mxu1 %v3942_v27 }
  0x35   :  { %3488 = vmatpush3.msra.mxu1 %v414_v40  ;;  %v4156_v40 = vld [vmem:[%s4780_s5] sm:$0xff] }
  0x36   :  { %3489 = vmatprep.subr.mxu1 %v3942_v27  ;;  %3495 = vmatpush3.msra.mxu0 %v4156_v40 }
  0x37   :  { %3490 = vmatpush3.msra.mxu1 %v413_v41  ;;  %v3823_v41 = vld [vmem:[%s4777_s2 + $0x30] sm:$0xff]   ;;  %1134 = vrot.lane.b32.xlu0 %v4156_v40, %s3944_s18 }
  0x38   :  { %3517 = vmatprep.subr.bf16.mxu1 %v3823_v41 }
  0xce   :  { %v3441_v43 = vpop.f32.mrf.mxu0  ;;  %v3451_v44 = vpop.f32.mrf.mxu1 }
  0xcf   :  { %v214_v61 = vadd.f32 %v3451_v44, %v3441_v43  ;;  %v3825_v43 = vld [vmem:[%s4777_s2 + $0x68] sm:$0xff]   ;;  %v3826_v44 = vld [vmem:[%s4777_s2 + $0x20] sm:$0xff]  }
  0xd0   :  { %v134_v45 = vpop.f32.mrf.mxu0  ;;  %v205_v47 = vpop.f32.mrf.mxu1  ;;  %3499 = vmatprep.subr.bf16.mxu0 %v3825_v43 }
  0xd1   :  { %v206_v58 = vadd.f32 %v205_v47, %v134_v45  ;;  %v3828_v45 = vld [vmem:[%s4777_s2 + $0x18] sm:$0xff]  }
  0xd2   :  { %v3442_v48 = vpop.f32.mrf.mxu0  ;;  %v3452_v51 = vpop.f32.mrf.mxu1 }
  0xd3   :  { %v217_v59 = vadd.f32 %v3452_v51, %v3442_v48 }
  0xd4   :  { %v137_v52 = vpop.f32.mrf.mxu0  ;;  %v208_v56 = vpop.f32.mrf.mxu1 }
  0xd5   :  { %v209_v62 = vadd.f32 %v208_v56, %v137_v52 }
  0xda   :  { %v3461_v55 = vpop.f32.mrf.mxu0 }
  0xdb   :  { %v4131_v4 = vadd.f32 %v3461_v55, %v214_v61 }
  0xdc   :  { %v291_v57 = vpop.f32.mrf.mxu0 }
  0xdd   :  { %v4125_v63 = vadd.f32 %v291_v57, %v206_v58  ;;  %v396_v9 = vmul.f32 %v4131_v4, %v4131_v4  ;;  %v383_v14 = vsel %vm379_vm6, %v4131_v4, 0.0  ;;  %v507_v57 = vld [vmem:[%s4781_s6] sm:$0x1] }
  0xde   :  { %v3462_v60 = vpop.f32.mrf.mxu0 }
  0xdf   :  { %v4127_v0 = vadd.f32 %v3462_v60, %v217_v59  ;;  %v394_v6 = vmul.f32 %v4125_v63, %v4125_v63  ;;  %v380_v10 = vsel %vm379_vm6, %v4125_v63, 0.0  ;;  %v401_v20 = vsel %vm379_vm6, %v396_v9, 0.0  ;;  %v508_v60 = vld [vmem:[%s4781_s6 + $0x1] sm:$0x1]  ;;  %v3832_v9 = vld [vmem:[%s4777_s2 + $0x8] sm:$0xff]  }
  0xe0   :  { %v294_v2 = vpop.f32.mrf.mxu0 }
  0xe1   :  { %v4133_v5 = vadd.f32 %v294_v2, %v209_v62  ;;  %v378_v7 = vmul.f32 %v2970_v1, %v4127_v0  ;;  %v398_v15 = vsel %vm379_vm6, %v394_v6, 0.0  ;;  %v3827_v2 = vld [vmem:[%s4777_s2 + $0x60] sm:$0xff]   ;;  %v3829_v6 = vld [vmem:[%s4777_s2 + $0x58] sm:$0xff]  }
  0xe3   :  { %v376_v8 = vmul.f32 %v2969_v3, %v4133_v5  ;;  %v397_v16 = vmul.f32 %v378_v7, %v4127_v0  ;;  %v386_v21 = vsel %vm385_vm7, %v378_v7, 0.0  ;;  %v3830_v7 = vld [vmem:[%s4777_s2 + $0x10] sm:$0xff]  }
  0xe5   :  { %v381_v11 = vsel %vm379_vm6, %v376_v8, 0.0  ;;  %v395_v12 = vmul.f32 %v376_v8, %v4133_v5  ;;  %v403_v24 = vsel %vm385_vm7, %v397_v16, 0.0  ;;  %v3831_v8 = vld [vmem:[%s4777_s2 + $0x50] sm:$0xff]   ;;  %v4217_v16 = vsub.s32 1, %v4115_v46 }
  0xe6   :  { %v382_v13 = vadd.f32 %v381_v11, %v380_v10  ;;  %v3833_v10 = vld [vmem:[%s4777_s2 + $0x48] sm:$0xff]   ;;  %v3834_v11 = vld [vmem:[%s4777_s2] sm:$0xff]   ;;  %vm2242_vm7 = vcmask 1045504  }
  0xe7   :  { %v399_v17 = vsel %vm379_vm6, %v395_v12, 0.0  ;;  %v3835_v12 = vld [vmem:[%s4777_s2 + $0x40] sm:$0xff]  }
  0xe8   :  { %v384_v18 = vadd.f32 %v383_v14, %v382_v13  ;;  %v400_v19 = vadd.f32 %v399_v17, %v398_v15  ;;  %v3836_v13 = vld [vmem:[%s4777_s2 + $0x38] sm:$0xff]   ;;  %v3837_v14 = vld [vmem:[%s4777_s2 + $0xa0] sm:$0xff]   ;;  %v4214_v15 = vsub.s32 0, %v4115_v46 }
  0xea   :  { %v387_v22 = vadd.f32 %v386_v21, %v384_v18  ;;  %v402_v23 = vadd.f32 %v401_v20, %v400_v19 }
  0xec   :  { %v388_v25 = vrot.slane %v387_v22, 4  ;;  %v404_v26 = vadd.f32 %v403_v24, %v402_v23 }
  0xee   :  { %v389_v28 = vadd.f32 %v388_v25, %v387_v22  ;;  %v405_v29 = vrot.slane %v404_v26, 4 }
  0xf0   :  { %v406_v30 = vadd.f32 %v405_v29, %v404_v26  ;;  %v390_v31 = vrot.slane %v389_v28, 2 }
  0xf2   :  { %v391_v32 = vadd.f32 %v390_v31, %v389_v28  ;;  %v407_v33 = vrot.slane %v406_v30, 2 }
  0xf4   :  { %v392_v34 = vrot.slane %v391_v32, 1  ;;  %v408_v35 = vadd.f32 %v407_v33, %v406_v30 }
  0xf6   :  { %v409_v36 = vrot.slane %v408_v35, 1  ;;  %v393_v37 = vadd.f32 %v392_v34, %v391_v32 }
  0xf8   :  { %v410_v38 = vadd.f32 %v409_v36, %v408_v35 }
  0xfa   :  { %v412_v39 = vsel %vm411_vm8, %v393_v37, %v410_v38 }
  0xfb   :  { %3492 = vmatmul.mubr.msk.f32.vlgmr.msra.gmra.mxu1 %vm379_vm6, %v412_v39 }
  0xfc   :  { %3518 = vmatpush3.bf16.msra.mxu1 %v3823_v41 }
  0xfd   :  { %3519 = vmatprep.subr.bf16.mxu1 %v3824_v42 }
 0x100   :  { %3520 = vmatpush3.bf16.msra.mxu1 %v3824_v42 }
 0x101   :  { %3521 = vmatprep.subr.bf16.mxu1 %v3826_v44 }
 0x104   :  { %3522 = vmatpush3.bf16.msra.mxu1 %v3826_v44 }
 0x105   :  { %3523 = vmatprep.subr.bf16.mxu1 %v3828_v45 }
 0x108   :  { %3524 = vmatpush3.bf16.msra.mxu1 %v3828_v45  ;;  %v3839_v45 = vld [vmem:[%s4777_s2 + $0x90] sm:$0xff]  }
 0x109   :  { %3525 = vmatprep.subr.bf16.mxu1 %v3830_v7 }
 0x10c   :  { %3526 = vmatpush3.bf16.msra.mxu1 %v3830_v7 }
 0x10d   :  { %3527 = vmatprep.subr.bf16.mxu1 %v3832_v9 }
 0x110   :  { %3528 = vmatpush3.bf16.msra.mxu1 %v3832_v9 }
 0x111   :  { %3529 = vmatprep.subr.bf16.mxu1 %v3834_v11 }
 0x114   :  { %3530 = vmatpush3.bf16.msra.mxu1 %v3834_v11 }
 0x115   :  { %3553 = vmatprep.subr.mxu1 %v3942_v27 }
 0x1bb   :  { %v496_v47 = vpop.f32.mrf.mxu1 }
 0x1bc   :  { %v501_v48 = vmul.f32 0.0025510204, %v496_v47  ;;  %v3840_v47 = vld [vmem:[%s4777_s2 + $0x88] sm:$0xff]  }
 0x1bd   :  { %v3493_v49 = vpop.f32.mrf.mxu1 }
 0x1be   :  { %v502_v50 = vmul.f32 %v501_v48, %v501_v48  ;;  %v3842_v49 = vld [vmem:[%s4777_s2 + $0x78] sm:$0xff]  }
 0x1c0   :  { %v504_v51 = vrot.slane %v502_v50, 7  ;;  %v3843_v50 = vld [vmem:[%s4777_s2 + $0x70] sm:$0xff]  }
 0x1c2   :  { %v506_v52 = vsub.f32 %v501_v48, %v504_v51  ;;  %v1035_v51 = vld [vmem:[%s4779_s4 + $0xc8] sm:$0xff] }
 0x1c4   :  { %v509_v55 = vadd.f32 1e-05, %v506_v52  ;;  %v1034_v52 = vld [vmem:[%s4779_s4 + $0xc0] sm:$0xff] }
 0x1c6   :  { %3914 = vrsqrt.f32 %v509_v55  ;;  %v1033_v55 = vld [vmem:[%s4779_s4 + $0xb8] sm:$0xff] }
 0x1d3   :  { %v3915_v56 = vpop.eup %3914 }
 0x1d4   :  { %v512_v58 = vrot.slane %v3915_v56, 1  ;;  %v1032_v56 = vld [vmem:[%s4779_s4 + $0xb0] sm:$0xff] }
 0x1d6   :  { %v514_v59 = vmul.f32 %v512_v58, %v507_v57  ;;  %v1031_v57 = vld [vmem:[%s4779_s4 + $0xa8] sm:$0xff]  ;;  %v1030_v58 = vld [vmem:[%s4779_s4 + $0xa0] sm:$0xff] }
 0x1d8   :  { %v515_v61 = vmul.f32 %v514_v59, %v501_v48  ;;  %v3841_v48 = vld [vmem:[%s4777_s2 + $0x80] sm:$0xff]  }
 0x1da   :  { %v516_v62 = vsub.f32 %v508_v60, %v515_v61  ;;  %v1028_v60 = vld [vmem:[%s4779_s4 + $0x90] sm:$0xff]  ;;  %v1027_v61 = vld [vmem:[%s4779_s4 + $0x88] sm:$0xff] }
 0x1dc   :  { %v518_v1 = vrot.slane %v516_v62, 7  ;;  %v1026_v62 = vld [vmem:[%s4779_s4 + $0x80] sm:$0xff] }
 0x1de   :  { %v520_v3 = vsel %vm411_vm8, %v514_v59, %v518_v1  ;;  %v1029_v59 = vld [vmem:[%s4779_s4 + $0x98] sm:$0xff] }
 0x1df   :  { %3497 = vmatmul.mubr.msk.f32.vlgmr.msra.gmra.mxu0 %vm522_vm9, %v520_v3  ;;  %v1025_v1 = vld [vmem:[%s4779_s4 + $0x78] sm:$0xff]  ;;  %v4307_v3 = vld [vmem:[%s4780_s5 + $0x8] sm:$0xff] }
 0x1e0   :  { %3500 = vmatpush3.bf16.msra.mxu0 %v3825_v43  ;;  %v3838_v43 = vld [vmem:[%s4777_s2 + $0x98] sm:$0xff]   ;;  %1136 = vrot.lane.b32.xlu0 %v4307_v3, %s3944_s18 }
 0x1e1   :  { %3501 = vmatprep.subr.bf16.mxu0 %v3827_v2  ;;  %1726 = vrot.lane.b32.xlu1 %v4307_v3, %s3945_s14 }
 0x1e4   :  { %3502 = vmatpush3.bf16.msra.mxu0 %v3827_v2  ;;  %v1024_v2 = vld [vmem:[%s4779_s4 + $0x70] sm:$0xff] }
 0x1e5   :  { %3503 = vmatprep.subr.bf16.mxu0 %v3829_v6 }
 0x1e8   :  { %3504 = vmatpush3.bf16.msra.mxu0 %v3829_v6 }
 0x1e9   :  { %3505 = vmatprep.subr.bf16.mxu0 %v3831_v8 }
 0x1ec   :  { %3506 = vmatpush3.bf16.msra.mxu0 %v3831_v8 }
 0x1ed   :  { %3507 = vmatprep.subr.bf16.mxu0 %v3833_v10 }
 0x1f0   :  { %3508 = vmatpush3.bf16.msra.mxu0 %v3833_v10 }
 0x1f1   :  { %3509 = vmatprep.subr.bf16.mxu0 %v3835_v12 }
 0x1f4   :  { %3510 = vmatpush3.bf16.msra.mxu0 %v3835_v12 }
 0x1f5   :  { %3511 = vmatprep.subr.bf16.mxu0 %v3836_v13 }
 0x1f8   :  { %3512 = vmatpush3.bf16.msra.mxu0 %v3836_v13 }
 0x1f9   :  { %3535 = vmatprep.subr.bf16.mxu0 %v3837_v14 }
 0x29f   :  { %v592_v17 = vpop.f32.mrf.mxu0 }
 0x2a0   :  { %v599_v18 = vrot.slane %v592_v17, %v4214_v15  ;;  %v607_v19 = vrot.slane %v592_v17, %v4217_v16 }
 0x2a1   :  { %v3498_v20 = vpop.f32.mrf.mxu0 }
 0x2a2   :  { %v600_v21 = vmul.f32 %v599_v18, %v4125_v63  ;;  %v601_v22 = vmul.f32 %v599_v18, %v4133_v5  ;;  %v602_v23 = vmul.f32 %v599_v18, %v4131_v4  ;;  %v603_v24 = vmul.f32 %v599_v18, %v4127_v0 }
 0x2a4   :  { %v608_v25 = vadd.f32 %v607_v19, %v600_v21  ;;  %v609_v26 = vadd.f32 %v607_v19, %v601_v22  ;;  %v610_v28 = vadd.f32 %v607_v19, %v602_v23  ;;  %v611_v29 = vadd.f32 %v607_v19, %v603_v24 }
 0x2a5   :  { %v3029_v24 = vsel %vm978_vm10, 1.0, %v3942_v27  ;;  %vm2446_vm10 = vcmask 1044480  }
 0x2a6   :  { %v614_v46 = vmax.f32 %v610_v28, 0.0  ;;  %v615_v30 = vmax.f32 %v611_v29, 0.0  ;;  %v612_v31 = vmax.f32 %v608_v25, 0.0  ;;  %v613_v32 = vmax.f32 %v609_v26, 0.0 }
 0x2a7   :  { %v3028_v26 = vsel %vm976_vm11, 1.0, %v3942_v27 }
 0x2a8   :  { %v616_v33 = vpack.c.bf16 %v613_v32, %v612_v31  ;;  %v617_v34 = vpack.c.bf16 %v615_v30, %v614_v46 }
 0x2aa   :  { %3531 = vmatprep.mubr.msk.bf16.mxu1 %vm379_vm6, %v616_v33  ;;  %v650_v35 = vshll.u32 %v616_v33, 16  ;;  %v655_v63 = vshll.u32 %v617_v34, 16  ;;  %v648_v5 = vshrl.u32 %v616_v33, 16  ;;  %v659_v37 = vshrl.u32 %v617_v34, 16 }
 0x2ab   :  { %3532 = vmatmul.mubr.msk.bf16.vlgmr.msra.gmra.mxu1 %vm379_vm6, %v617_v34  ;;  %v871_v38 = vrot.slane %v616_v33, 1  ;;  %v872_v39 = vrot.slane %v617_v34, 1 }
 0x2ac   :  { %v652_v4 = vrot.slane %v650_v35, 1  ;;  %v657_v36 = vrot.slane %v655_v63, 1  ;;  %3577 = vmatprep.mubr.msk.f32.mxu1 %vm3943_vm3, %v3942_v27  ;;  %3554 = vmatpush3.msra.mxu1 %v1035_v51 }
 0x2ad   :  { %v873_v44 = vsel %vm229_vm2, %v871_v38, %v872_v39  ;;  %3555 = vmatprep.subr.mxu1 %v3942_v27 }
 0x2ae   :  { %v653_v0 = vor.u32 %v652_v4, %v648_v5  ;;  %v661_v42 = vor.u32 %v659_v37, %v657_v36  ;;  %3556 = vmatpush3.msra.mxu1 %v1034_v52 }
 0x2af   :  { %3557 = vmatprep.subr.mxu1 %v3942_v27 }
 0x2b0   :  { %v658_v41 = vsel %vm59_vm1, %v653_v0, %v657_v36  ;;  %3558 = vmatpush3.msra.mxu1 %v1033_v55 }
 0x2b1   :  { %3513 = vmatprep.mubr.msk.bf16.mxu0 %vm379_vm6, %v658_v41  ;;  %3559 = vmatprep.subr.mxu1 %v3942_v27 }
 0x2b2   :  { %3514 = vmatmul.mubr.msk.bf16.vlgmr.msra.gmra.mxu0 %vm379_vm6, %v661_v42  ;;  %3560 = vmatpush3.msra.mxu1 %v1032_v56 }
 0x2b3   :  { %3536 = vmatpush3.bf16.msra.mxu0 %v3837_v14  ;;  %3549 = vmatprep.mubr.msk.bf16.mxu0 %vm379_vm6, %v873_v44 }
 0x2b4   :  { %3537 = vmatprep.subr.bf16.mxu0 %v3838_v43  ;;  %3561 = vmatprep.subr.mxu1 %v3942_v27 }
 0x2b5   :  { %3562 = vmatpush3.msra.mxu1 %v1031_v57 }
 0x2b6   :  { %3563 = vmatprep.subr.mxu1 %v3942_v27 }
 0x2b7   :  { %3538 = vmatpush3.bf16.msra.mxu0 %v3838_v43  ;;  %3564 = vmatpush3.msra.mxu1 %v1030_v58 }
 0x2b8   :  { %3539 = vmatprep.subr.bf16.mxu0 %v3839_v45  ;;  %3565 = vmatprep.subr.mxu1 %v3942_v27 }
 0x2b9   :  { %3566 = vmatpush3.msra.mxu1 %v1029_v59 }
 0x2ba   :  { %3567 = vmatprep.subr.mxu1 %v3942_v27 }
 0x2bb   :  { %3540 = vmatpush3.bf16.msra.mxu0 %v3839_v45  ;;  %3568 = vmatpush3.msra.mxu1 %v1028_v60 }
 0x2bc   :  { %3541 = vmatprep.subr.bf16.mxu0 %v3840_v47  ;;  %3569 = vmatprep.subr.mxu1 %v3942_v27 }
 0x2bd   :  { %3570 = vmatpush3.msra.mxu1 %v1027_v61 }
 0x2be   :  { %3571 = vmatprep.subr.mxu1 %v3942_v27 }
 0x2bf   :  { %3542 = vmatpush3.bf16.msra.mxu0 %v3840_v47  ;;  %3572 = vmatpush3.msra.mxu1 %v1026_v62  ;;  %v1135_v62 = vpop.permute.xlu0 %1134 }
 0x2c0   :  { %3543 = vmatprep.subr.bf16.mxu0 %v3841_v48  ;;  %3573 = vmatprep.subr.mxu1 %v3942_v27 }
 0x2c1   :  { %3574 = vmatpush3.msra.mxu1 %v1025_v1 }
 0x2c2   :  { %3575 = vmatprep.subr.mxu1 %v3942_v27 }
 0x2c3   :  { %3544 = vmatpush3.bf16.msra.mxu0 %v3841_v48  ;;  %3576 = vmatpush3.msra.mxu1 %v1024_v2  ;;  %v1137_v1 = vpop.permute.xlu0 %1136 }
 0x2c4   :  { %3545 = vmatprep.subr.bf16.mxu0 %v3842_v49  ;;  %v1139_v2 = vsel %vm1138_vm14, %v1135_v62, %v1137_v1 }
 0x2c7   :  { %3546 = vmatpush3.bf16.msra.mxu0 %v3842_v49 }
 0x2c8   :  { %3547 = vmatprep.subr.bf16.mxu0 %v3843_v50 }
 0x2cb   :  { %3548 = vmatpush3.bf16.msra.mxu0 %v3843_v50 }
 0x2cc   :  { %3580 = vmatprep.subr.mxu0 %v3942_v27 }
 0x2ce   :  { %3550 = vmatmul.mubr.msk.bf16.vlgmr.msra.gmra.mxu0 %vm379_vm6, %v872_v39  ;;  %vm1591_vm6 = vcmask 648192  }
 0x2cf   :  { %3582 = vmatprep.mubr.msk.f32.mxu0 %vm3943_vm3, %v3942_v27  ;;  %3581 = vmatpush3.msra.mxu0 %v1139_v2 }
 0x36b   :  { %v3533_v8 = vpop.f32.mrf.mxu1 }
 0x36d   :  { %v839_v10 = vpop.f32.mrf.mxu1 }
 0x36f   :  { %v3534_v12 = vpop.f32.mrf.mxu1 }
 0x371   :  { %v842_v40 = vpop.f32.mrf.mxu1 }
 0x372   :  { %v3515_v6 = vpop.f32.mrf.mxu0 }
 0x373   :  { %v848_v20 = vadd.f32 %v3533_v8, %v3515_v6  ;;  %v3844_v6 = vld [vmem:[%s4778_s3 + $0x28] sm:$0xff]   ;;  %v3848_v8 = vld [vmem:[%s4778_s3 + $0x50] sm:$0xff]  }
 0x374   :  { %v744_v7 = vpop.f32.mrf.mxu0  ;;  %3601 = vmatprep.subr.bf16.mxu0 %v3844_v6 }
 0x375   :  { %v840_v17 = vadd.f32 %v839_v10, %v744_v7  ;;  %v3846_v7 = vld [vmem:[%s4778_s3 + $0x58] sm:$0xff]  }
 0x376   :  { %v3516_v9 = vpop.f32.mrf.mxu0  ;;  %3585 = vmatprep.subr.bf16.mxu1 %v3846_v7 }
 0x377   :  { %v851_v18 = vadd.f32 %v3534_v12, %v3516_v9 }
 0x378   :  { %v747_v11 = vpop.f32.mrf.mxu0 }
 0x379   :  { %v843_v21 = vadd.f32 %v842_v40, %v747_v11  ;;  %v1116_v40 = vld [vmem:[%s4781_s6 + $0x2] sm:$0x1] }
 0x38e   :  { %v3551_v13 = vpop.f32.mrf.mxu0 }
 0x38f   :  { %v4318_v28 = vadd.f32 %v3551_v13, %v848_v20 }
 0x390   :  { %v956_v14 = vpop.f32.mrf.mxu0 }
 0x391   :  { %v4312_v22 = vadd.f32 %v956_v14, %v840_v17  ;;  %v1008_v32 = vmul.f32 %v4318_v28, %v4318_v28  ;;  %v995_v5 = vsel %vm991_vm12, %v4318_v28, 0.0 }
 0x392   :  { %v3552_v19 = vpop.f32.mrf.mxu0 }
 0x393   :  { %v4314_v23 = vadd.f32 %v3552_v19, %v851_v18  ;;  %v1006_v46 = vmul.f32 %v4312_v22, %v4312_v22  ;;  %v992_v33 = vsel %vm991_vm12, %v4312_v22, 0.0  ;;  %v1013_v39 = vsel %vm991_vm12, %v1008_v32, 0.0  ;;  %v3849_v32 = vld [vmem:[%s4778_s3 + $0x10] sm:$0xff]  }
 0x394   :  { %v959_v25 = vpop.f32.mrf.mxu0 }
 0x395   :  { %v4320_v29 = vadd.f32 %v959_v25, %v843_v21  ;;  %v990_v30 = vmul.f32 %v3029_v24, %v4314_v23  ;;  %v1010_v4 = vsel %vm991_vm12, %v1006_v46, 0.0  ;;  %v1117_v21 = vld [vmem:[%s4781_s6 + $0x3] sm:$0x1] }
 0x396   :  { %v3845_v46 = vld [vmem:[%s4778_s3 + $0x20] sm:$0xff]  }
 0x397   :  { %v988_v31 = vmul.f32 %v3028_v26, %v4320_v29  ;;  %v1009_v36 = vmul.f32 %v990_v30, %v4314_v23  ;;  %v998_v41 = vsel %vm997_vm13, %v990_v30, 0.0 }
 0x399   :  { %v993_v34 = vsel %vm991_vm12, %v988_v31, 0.0  ;;  %v1007_v35 = vmul.f32 %v988_v31, %v4320_v29  ;;  %v1015_v44 = vsel %vm997_vm13, %v1009_v36, 0.0  ;;  %v3847_v31 = vld [vmem:[%s4778_s3 + $0x18] sm:$0xff]   ;;  %v3856_v36 = vld [vmem:[%s4778_s3 + $0x88] sm:$0xff]  }
 0x39a   :  { %v994_v63 = vadd.f32 %v993_v34, %v992_v33  ;;  %v3850_v33 = vld [vmem:[%s4778_s3 + $0x48] sm:$0xff]  }
 0x39b   :  { %v1011_v0 = vsel %vm991_vm12, %v1007_v35, 0.0  ;;  %v3851_v34 = vld [vmem:[%s4778_s3 + $0x8] sm:$0xff]   ;;  %v3852_v35 = vld [vmem:[%s4778_s3 + $0x40] sm:$0xff]  }
 0x39c   :  { %v996_v37 = vadd.f32 %v995_v5, %v994_v63  ;;  %v1012_v38 = vadd.f32 %v1011_v0, %v1010_v4  ;;  %v3853_v63 = vld [vmem:[%s4778_s3] sm:$0xff]   ;;  %v3854_v5 = vld [vmem:[%s4778_s3 + $0x38] sm:$0xff]   ;;  %v3855_v4 = vld [vmem:[%s4778_s3 + $0x30] sm:$0xff]  }
 0x39e   :  { %v999_v42 = vadd.f32 %v998_v41, %v996_v37  ;;  %v1014_v43 = vadd.f32 %v1013_v39, %v1012_v38 }
 0x3a0   :  { %v1000_v45 = vrot.slane %v999_v42, 4  ;;  %v1016_v47 = vadd.f32 %v1015_v44, %v1014_v43 }
 0x3a2   :  { %v1001_v48 = vadd.f32 %v1000_v45, %v999_v42  ;;  %v1017_v49 = vrot.slane %v1016_v47, 4 }
 0x3a4   :  { %v1018_v50 = vadd.f32 %v1017_v49, %v1016_v47  ;;  %v1002_v51 = vrot.slane %v1001_v48, 2 }
 0x3a6   :  { %v1003_v52 = vadd.f32 %v1002_v51, %v1001_v48  ;;  %v1019_v55 = vrot.slane %v1018_v50, 2 }
 0x3a8   :  { %v1004_v56 = vrot.slane %v1003_v52, 1  ;;  %v1020_v57 = vadd.f32 %v1019_v55, %v1018_v50 }
 0x3aa   :  { %v1021_v58 = vrot.slane %v1020_v57, 1  ;;  %v1005_v59 = vadd.f32 %v1004_v56, %v1003_v52 }
 0x3ac   :  { %v1022_v60 = vadd.f32 %v1021_v58, %v1020_v57 }
 0x3ae   :  { %v1023_v61 = vsel %vm411_vm8, %v1005_v59, %v1022_v60 }
 0x3af   :  { %3578 = vmatmul.mubr.msk.f32.vlgmr.msra.gmra.mxu1 %vm991_vm12, %v1023_v61 }
 0x3b0   :  { %3586 = vmatpush3.bf16.msra.mxu1 %v3846_v7 }
 0x3b1   :  { %3587 = vmatprep.subr.bf16.mxu1 %v3848_v8 }
 0x3b4   :  { %3588 = vmatpush3.bf16.msra.mxu1 %v3848_v8  ;;  %v3858_v8 = vld [vmem:[%s4778_s3 + $0x78] sm:$0xff]  }
 0x3b5   :  { %3589 = vmatprep.subr.bf16.mxu1 %v3850_v33 }
 0x3b8   :  { %3590 = vmatpush3.bf16.msra.mxu1 %v3850_v33 }
 0x3b9   :  { %3591 = vmatprep.subr.bf16.mxu1 %v3852_v35 }
 0x3bc   :  { %3592 = vmatpush3.bf16.msra.mxu1 %v3852_v35 }
 0x3bd   :  { %3593 = vmatprep.subr.bf16.mxu1 %v3854_v5 }
 0x3c0   :  { %3594 = vmatpush3.bf16.msra.mxu1 %v3854_v5 }
 0x3c1   :  { %3595 = vmatprep.subr.bf16.mxu1 %v3855_v4 }
 0x3c4   :  { %3596 = vmatpush3.bf16.msra.mxu1 %v3855_v4 }
 0x3c5   :  { %3617 = vmatprep.subr.bf16.mxu1 %v3856_v36 }
 0x46f   :  { %v1105_v9 = vpop.f32.mrf.mxu1 }
 0x470   :  { %v1110_v10 = vmul.f32 0.0034722222, %v1105_v9  ;;  %v3859_v9 = vld [vmem:[%s4778_s3 + $0x70] sm:$0xff]  }
 0x471   :  { %v3579_v11 = vpop.f32.mrf.mxu1 }
 0x472   :  { %v1111_v12 = vmul.f32 %v1110_v10, %v1110_v10  ;;  %v3861_v11 = vld [vmem:[%s4778_s3 + $0x60] sm:$0xff]  }
 0x474   :  { %v1113_v13 = vrot.slane %v1111_v12, 7  ;;  %v1627_v12 = vld [vmem:[%s4779_s4 + $0x118] sm:$0xff] }
 0x476   :  { %v1115_v14 = vsub.f32 %v1110_v10, %v1113_v13  ;;  %v1626_v13 = vld [vmem:[%s4779_s4 + $0x110] sm:$0xff] }
 0x478   :  { %v1118_v17 = vadd.f32 1e-05, %v1115_v14  ;;  %v1625_v14 = vld [vmem:[%s4779_s4 + $0x108] sm:$0xff] }
 0x47a   :  { %3916 = vrsqrt.f32 %v1118_v17  ;;  %v1624_v17 = vld [vmem:[%s4779_s4 + $0x100] sm:$0xff] }
 0x487   :  { %v3917_v18 = vpop.eup %3916 }
 0x488   :  { %v1121_v19 = vrot.slane %v3917_v18, 1  ;;  %v1623_v18 = vld [vmem:[%s4779_s4 + $0xf8] sm:$0xff] }
 0x48a   :  { %v1123_v20 = vmul.f32 %v1121_v19, %v1116_v40  ;;  %v1622_v40 = vld [vmem:[%s4779_s4 + $0xf0] sm:$0xff]  ;;  %v1621_v19 = vld [vmem:[%s4779_s4 + $0xe8] sm:$0xff] }
 0x48c   :  { %v1124_v24 = vmul.f32 %v1123_v20, %v1110_v10  ;;  %v3860_v10 = vld [vmem:[%s4778_s3 + $0x68] sm:$0xff]  }
 0x48e   :  { %v1125_v25 = vsub.f32 %v1117_v21, %v1124_v24  ;;  %v1619_v21 = vld [vmem:[%s4779_s4 + $0xd8] sm:$0xff]  ;;  %v1618_v24 = vld [vmem:[%s4779_s4 + $0xd0] sm:$0xff] }
 0x490   :  { %v1127_v26 = vrot.slane %v1125_v25, 7  ;;  %v1723_v25 = vld [vmem:[%s4780_s5 + $0x10] sm:$0xff] }
 0x491   :  { %1728 = vrot.lane.b32.xlu1 %v1723_v25, %s3945_s14 }
 0x492   :  { %v1129_v30 = vsel %vm411_vm8, %v1123_v20, %v1127_v26  ;;  %v1620_v20 = vld [vmem:[%s4779_s4 + $0xe0] sm:$0xff] }
 0x493   :  { %3583 = vmatmul.mubr.msk.f32.vlgmr.msra.gmra.mxu0 %vm522_vm9, %v1129_v30 }
 0x494   :  { %3602 = vmatpush3.bf16.msra.mxu0 %v3844_v6  ;;  %v3857_v6 = vld [vmem:[%s4778_s3 + $0x80] sm:$0xff]   ;;  %s3946_s3 = smov [#allocation2]  }
 0x495   :  { %3603 = vmatprep.subr.bf16.mxu0 %v3845_v46  ;;  %s2934_s0 = sshll.u32 %s3946_s3, 4  ;;  %s2935_s0 = int_to_ptr.vmem [resolvable:$true] %s2934_s0 }
 0x496   :  { %p3925_p1 = scmp.lt.s32.totalorder %s2935_s0, %s2935_s0 }
 0x498   :  { %3604 = vmatpush3.bf16.msra.mxu0 %v3845_v46 }
 0x499   :  { %3605 = vmatprep.subr.bf16.mxu0 %v3847_v31 }
 0x49c   :  { %3606 = vmatpush3.bf16.msra.mxu0 %v3847_v31 }
 0x49d   :  { %3607 = vmatprep.subr.bf16.mxu0 %v3849_v32 }
 0x4a0   :  { %3608 = vmatpush3.bf16.msra.mxu0 %v3849_v32 }
 0x4a1   :  { %3609 = vmatprep.subr.bf16.mxu0 %v3851_v34 }
 0x4a4   :  { %3610 = vmatpush3.bf16.msra.mxu0 %v3851_v34 }
 0x4a5   :  { %3611 = vmatprep.subr.bf16.mxu0 %v3853_v63 }
 0x4a8   :  { %3612 = vmatpush3.bf16.msra.mxu0 %v3853_v63 }
 0x4a9   :  { %3633 = vmatprep.subr.mxu0 %v3942_v27 }
 0x553   :  { %v1210_v0 = vpop.f32.mrf.mxu0 }
 0x554   :  { %v1217_v37 = vrot.slane %v1210_v0, %v4214_v15  ;;  %v1225_v38 = vrot.slane %v1210_v0, %v4217_v16 }
 0x555   :  { %v3584_v39 = vpop.f32.mrf.mxu0 }
 0x556   :  { %v1218_v41 = vmul.f32 %v1217_v37, %v4312_v22  ;;  %v1219_v42 = vmul.f32 %v1217_v37, %v4320_v29  ;;  %v1220_v43 = vmul.f32 %v1217_v37, %v4318_v28  ;;  %v1221_v44 = vmul.f32 %v1217_v37, %v4314_v23 }
 0x558   :  { %v1226_v45 = vadd.f32 %v1225_v38, %v1218_v41  ;;  %v1227_v47 = vadd.f32 %v1225_v38, %v1219_v42  ;;  %v1228_v48 = vadd.f32 %v1225_v38, %v1220_v43  ;;  %v1229_v49 = vadd.f32 %v1225_v38, %v1221_v44 }
 0x559   :  { %v3081_v41 = vsel %vm1572_vm15, 1.0, %v3942_v27  ;;  %v3080_v43 = vsel %vm1570_vm4, 1.0, %v3942_v27 }
 0x55a   :  { %v1232_v50 = vmax.f32 %v1228_v48, 0.0  ;;  %v1233_v51 = vmax.f32 %v1229_v49, 0.0  ;;  %v1230_v52 = vmax.f32 %v1226_v45, 0.0  ;;  %v1231_v55 = vmax.f32 %v1227_v47, 0.0 }
 0x55c   :  { %v1234_v56 = vpack.c.bf16 %v1231_v55, %v1230_v52  ;;  %v1235_v57 = vpack.c.bf16 %v1233_v51, %v1232_v50 }
 0x55e   :  { %3613 = vmatprep.mubr.msk.bf16.mxu0 %vm991_vm12, %v1234_v56  ;;  %v1264_v58 = vshll.u32 %v1234_v56, 16  ;;  %v1269_v22 = vshll.u32 %v1235_v57, 16  ;;  %v1262_v29 = vshrl.u32 %v1234_v56, 16  ;;  %v1273_v60 = vshrl.u32 %v1235_v57, 16 }
 0x55f   :  { %3614 = vmatmul.mubr.msk.bf16.vlgmr.msra.gmra.mxu0 %vm991_vm12, %v1235_v57  ;;  %v1471_v61 = vrot.slane %v1234_v56, 1  ;;  %v1472_v62 = vrot.slane %v1235_v57, 1 }
 0x560   :  { %v1266_v28 = vrot.slane %v1264_v58, 1  ;;  %v1271_v59 = vrot.slane %v1269_v22, 1  ;;  %3653 = vmatprep.mubr.msk.f32.mxu0 %vm3943_vm3, %v3942_v27  ;;  %3634 = vmatpush3.msra.mxu0 %v1627_v12 }
 0x561   :  { %v1473_v7 = vsel %vm229_vm2, %v1471_v61, %v1472_v62  ;;  %3635 = vmatprep.subr.mxu0 %v3942_v27 }
 0x562   :  { %v1267_v23 = vor.u32 %v1266_v28, %v1262_v29  ;;  %v1275_v2 = vor.u32 %v1273_v60, %v1271_v59  ;;  %3636 = vmatpush3.msra.mxu0 %v1626_v13 }
 0x563   :  { %3637 = vmatprep.subr.mxu0 %v3942_v27 }
 0x564   :  { %v1272_v1 = vsel %vm59_vm1, %v1267_v23, %v1271_v59  ;;  %3638 = vmatpush3.msra.mxu0 %v1625_v14 }
 0x565   :  { %3597 = vmatprep.mubr.msk.bf16.mxu1 %vm991_vm12, %v1272_v1  ;;  %3639 = vmatprep.subr.mxu0 %v3942_v27 }
 0x566   :  { %3598 = vmatmul.mubr.msk.bf16.vlgmr.msra.gmra.mxu1 %vm991_vm12, %v1275_v2  ;;  %3640 = vmatpush3.msra.mxu0 %v1624_v17 }
 0x567   :  { %3618 = vmatpush3.bf16.msra.mxu1 %v3856_v36  ;;  %3629 = vmatprep.mubr.msk.bf16.mxu1 %vm991_vm12, %v1473_v7 }
 0x568   :  { %3619 = vmatprep.subr.bf16.mxu1 %v3857_v6  ;;  %3641 = vmatprep.subr.mxu0 %v3942_v27 }
 0x569   :  { %3642 = vmatpush3.msra.mxu0 %v1623_v18 }
 0x56a   :  { %3643 = vmatprep.subr.mxu0 %v3942_v27 }
 0x56b   :  { %3620 = vmatpush3.bf16.msra.mxu1 %v3857_v6  ;;  %3644 = vmatpush3.msra.mxu0 %v1622_v40  ;;  %v1727_v40 = vpop.permute.xlu1 %1726 }
 0x56c   :  { %3621 = vmatprep.subr.bf16.mxu1 %v3858_v8  ;;  %3645 = vmatprep.subr.mxu0 %v3942_v27 }
 0x56d   :  { %3646 = vmatpush3.msra.mxu0 %v1621_v19 }
 0x56e   :  { %3647 = vmatprep.subr.mxu0 %v3942_v27 }
 0x56f   :  { %3622 = vmatpush3.bf16.msra.mxu1 %v3858_v8  ;;  %3648 = vmatpush3.msra.mxu0 %v1620_v20  ;;  %v1729_v19 = vpop.permute.xlu1 %1728 }
 0x570   :  { %3623 = vmatprep.subr.bf16.mxu1 %v3859_v9  ;;  %3649 = vmatprep.subr.mxu0 %v3942_v27  ;;  %v1730_v20 = vsel %vm93_vm0, %v1727_v40, %v1729_v19  ;;  %vm2138_vm0 = vsmask.f32 6400 }
 0x571   :  { %3650 = vmatpush3.msra.mxu0 %v1619_v21  ;;  %v3862_v21 = vld [vmem:[%s4782_s7 + $0x20] sm:$0xff]  }
 0x572   :  { %3651 = vmatprep.subr.mxu0 %v3942_v27 }
 0x573   :  { %3624 = vmatpush3.bf16.msra.mxu1 %v3859_v9  ;;  %3652 = vmatpush3.msra.mxu0 %v1618_v24  ;;  %v3864_v24 = vld [vmem:[%s4782_s7 + $0x48] sm:$0xff]  }
 0x574   :  { %3625 = vmatprep.subr.bf16.mxu1 %v3860_v10  ;;  %3656 = vmatprep.subr.mxu0 %v3942_v27 }
 0x577   :  { %3626 = vmatpush3.bf16.msra.mxu1 %v3860_v10 }
 0x578   :  { %3627 = vmatprep.subr.bf16.mxu1 %v3861_v11 }
 0x57b   :  { %3628 = vmatpush3.bf16.msra.mxu1 %v3861_v11 }
 0x57c   :  { %3661 = vmatprep.subr.bf16.mxu1 %v3864_v24 }
 0x57e   :  { %3630 = vmatmul.mubr.msk.bf16.vlgmr.msra.gmra.mxu1 %vm991_vm12, %v1472_v62 }
 0x57f   :  { %3662 = vmatpush3.bf16.msra.mxu1 %v3864_v24  ;;  %v3877_v24 = vld [vmem:[%s4782_s7 + $0x80] sm:$0xff]  }
 0x61f   :  { %v3615_v30 = vpop.f32.mrf.mxu0 }
 0x621   :  { %v1441_v32 = vpop.f32.mrf.mxu0 }
 0x623   :  { %v3616_v34 = vpop.f32.mrf.mxu0 }
 0x625   :  { %v1444_v3 = vpop.f32.mrf.mxu0 }
 0x626   :  { %v3599_v26 = vpop.f32.mrf.mxu1 }
 0x627   :  { %v1450_v0 = vadd.f32 %v3615_v30, %v3599_v26 }
 0x628   :  { %v1352_v46 = vpop.f32.mrf.mxu1 }
 0x629   :  { %v1442_v5 = vadd.f32 %v1441_v32, %v1352_v46 }
 0x62a   :  { %v3600_v31 = vpop.f32.mrf.mxu1 }
 0x62b   :  { %v1453_v4 = vadd.f32 %v3616_v34, %v3600_v31 }
 0x62c   :  { %v1355_v33 = vpop.f32.mrf.mxu1 }
 0x62d   :  { %v1445_v37 = vadd.f32 %v1444_v3, %v1355_v33 }
 0x63e   :  { %v3631_v35 = vpop.f32.mrf.mxu1 }
 0x63f   :  { %v4471_v44 = vadd.f32 %v3631_v35, %v1450_v0  ;;  %v1708_v35 = vld [vmem:[%s4781_s6 + $0x4] sm:$0x1] }
 0x640   :  { %v1550_v63 = vpop.f32.mrf.mxu1 }
 0x641   :  { %v4465_v38 = vadd.f32 %v1550_v63, %v1442_v5  ;;  %v1602_v48 = vmul.f32 %v4471_v44, %v4471_v44  ;;  %v1589_v55 = vsel %vm1585_vm5, %v4471_v44, 0.0 }
 0x642   :  { %v3632_v36 = vpop.f32.mrf.mxu1 }
 0x643   :  { %v4467_v39 = vadd.f32 %v3632_v36, %v1453_v4  ;;  %v1600_v53 = vmul.f32 %v4465_v38, %v4465_v38  ;;  %v1586_v49 = vsel %vm1585_vm5, %v4465_v38, 0.0  ;;  %v1607_v28 = vsel %vm1585_vm5, %v1602_v48, 0.0  ;;  %v1709_v4 = vld [vmem:[%s4781_s6 + $0x5] sm:$0x1]  ;;  %v3870_v48 = vld [vmem:[%s4782_s7 + $0x30] sm:$0xff]  }
 0x644   :  { %v1553_v42 = vpop.f32.mrf.mxu1 }
 0x645   :  { %v4473_v45 = vadd.f32 %v1553_v42, %v1445_v37  ;;  %v1584_v54 = vmul.f32 %v3081_v41, %v4467_v39  ;;  %v1604_v56 = vsel %vm1585_vm5, %v1600_v53, 0.0  ;;  %v3863_v37 = vld [vmem:[%s4782_s7 + $0x18] sm:$0xff]   ;;  %v3865_v42 = vld [vmem:[%s4782_s7 + $0x10] sm:$0xff]   ;;  %v3867_v53 = vld [vmem:[%s4782_s7 + $0x8] sm:$0xff]  }
 0x647   :  { %v1582_v47 = vmul.f32 %v3080_v43, %v4473_v45  ;;  %v1603_v57 = vmul.f32 %v1584_v54, %v4467_v39  ;;  %v1592_v59 = vsel %vm1591_vm6, %v1584_v54, 0.0  ;;  %v3866_v43 = vld [vmem:[%s4782_s7 + $0x40] sm:$0xff]   ;;  %v3868_v54 = vld [vmem:[%s4782_s7 + $0x38] sm:$0xff]  }
 0x648   :  { %3663 = vmatprep.subr.bf16.mxu1 %v3866_v43 }
 0x649   :  { %v1587_v50 = vsel %vm1585_vm5, %v1582_v47, 0.0  ;;  %v1601_v51 = vmul.f32 %v1582_v47, %v4473_v45  ;;  %v1609_v61 = vsel %vm1591_vm6, %v1603_v57, 0.0  ;;  %3664 = vmatpush3.bf16.msra.mxu1 %v3866_v43  ;;  %v3869_v47 = vld [vmem:[%s4782_s7] sm:$0xff]   ;;  %v3886_v43 = vld [vmem:[%s4782_s7 + $0xb8] sm:$0xff]  }
 0x64a   :  { %v1588_v52 = vadd.f32 %v1587_v50, %v1586_v49  ;;  %3665 = vmatprep.subr.bf16.mxu1 %v3868_v54  ;;  %v3871_v49 = vld [vmem:[%s4782_s7 + $0x98] sm:$0xff]   ;;  %v3872_v50 = vld [vmem:[%s4782_s7 + $0x28] sm:$0xff]  }
 0x64b   :  { %v1605_v58 = vsel %vm1585_vm5, %v1601_v51, 0.0  ;;  %v3874_v51 = vld [vmem:[%s4782_s7 + $0x70] sm:$0xff]  }
 0x64c   :  { %v1590_v22 = vadd.f32 %v1589_v55, %v1588_v52  ;;  %v1606_v29 = vadd.f32 %v1605_v58, %v1604_v56 }
 0x64d   :  { %3666 = vmatpush3.bf16.msra.mxu1 %v3868_v54 }
 0x64e   :  { %v1593_v23 = vadd.f32 %v1592_v59, %v1590_v22  ;;  %v1608_v60 = vadd.f32 %v1607_v28, %v1606_v29  ;;  %3667 = vmatprep.subr.bf16.mxu1 %v3870_v48 }
 0x650   :  { %v1594_v62 = vrot.slane %v1593_v23, 4  ;;  %v1610_v1 = vadd.f32 %v1609_v61, %v1608_v60 }
 0x651   :  { %3668 = vmatpush3.bf16.msra.mxu1 %v3870_v48  ;;  %v3889_v48 = vld [vmem:[%s4782_s7 + $0xc8] sm:$0xff]  }
 0x652   :  { %v1595_v2 = vadd.f32 %v1594_v62, %v1593_v23  ;;  %v1611_v6 = vrot.slane %v1610_v1, 4  ;;  %3669 = vmatprep.subr.bf16.mxu1 %v3872_v50 }
 0x654   :  { %v1612_v7 = vadd.f32 %v1611_v6, %v1610_v1  ;;  %v1596_v8 = vrot.slane %v1595_v2, 2 }
 0x655   :  { %3670 = vmatpush3.bf16.msra.mxu1 %v3872_v50 }
 0x656   :  { %v1597_v9 = vadd.f32 %v1596_v8, %v1595_v2  ;;  %v1613_v10 = vrot.slane %v1612_v7, 2  ;;  %3689 = vmatprep.subr.bf16.mxu1 %v3874_v51 }
 0x658   :  { %v1598_v11 = vrot.slane %v1597_v9, 1  ;;  %v1614_v12 = vadd.f32 %v1613_v10, %v1612_v7 }
 0x65a   :  { %v1615_v13 = vrot.slane %v1614_v12, 1  ;;  %v1599_v14 = vadd.f32 %v1598_v11, %v1597_v9  ;;  %v3875_v11 = vld [vmem:[%s4782_s7 + $0x88] sm:$0xff]  }
 0x65c   :  { %v1616_v17 = vadd.f32 %v1615_v13, %v1614_v12 }
 0x65e   :  { %v1617_v18 = vsel %vm411_vm8, %v1599_v14, %v1616_v17 }
 0x65f   :  { %3654 = vmatmul.mubr.msk.f32.vlgmr.msra.gmra.mxu0 %vm1585_vm5, %v1617_v18 }
 0x660   :  { %3658 = vmatprep.mubr.msk.f32.mxu0 %vm3943_vm3, %v3942_v27  ;;  %3657 = vmatpush3.msra.mxu0 %v1730_v20  ;;  %v3876_v20 = vld [vmem:[%s4782_s7 + $0x68] sm:$0xff]  }
 0x661   :  { %3675 = vmatprep.subr.bf16.mxu0 %v3862_v21 }
 0x71f   :  { %v1697_v25 = vpop.f32.mrf.mxu0 }
 0x720   :  { %v1702_v26 = vmul.f32 0.005, %v1697_v25 }
 0x721   :  { %v3655_v46 = vpop.f32.mrf.mxu0 }
 0x722   :  { %v1703_v30 = vmul.f32 %v1702_v26, %v1702_v26  ;;  %v3879_v46 = vld [vmem:[%s4782_s7 + $0x78] sm:$0xff]  }
 0x724   :  { %v1705_v31 = vrot.slane %v1703_v30, 7 }
 0x726   :  { %v1707_v32 = vsub.f32 %v1702_v26, %v1705_v31 }
 0x728   :  { %v1710_v33 = vadd.f32 1e-05, %v1707_v32 }
 0x72a   :  { %3918 = vrsqrt.f32 %v1710_v33 }
 0x737   :  { %v3919_v34 = vpop.eup %3918 }
 0x738   :  { %v1713_v63 = vrot.slane %v3919_v34, 1  ;;  %v3880_v34 = vld [vmem:[%s4782_s7 + $0x58] sm:$0xff]  }
 0x73a   :  { %v1715_v5 = vmul.f32 %v1713_v63, %v1708_v35  ;;  %v3881_v35 = vld [vmem:[%s4782_s7 + $0xe8] sm:$0xff]  }
 0x73c   :  { %v1716_v3 = vmul.f32 %v1715_v5, %v1702_v26  ;;  %v3878_v26 = vld [vmem:[%s4782_s7 + $0x60] sm:$0xff]  }
 0x73e   :  { %v1717_v36 = vsub.f32 %v1709_v4, %v1716_v3  ;;  %v3882_v4 = vld [vmem:[%s4782_s7 + $0x50] sm:$0xff]   ;;  %v3883_v3 = vld [vmem:[%s4782_s7 + $0xe0] sm:$0xff]  }
 0x740   :  { %v1719_v0 = vrot.slane %v1717_v36, 7 }
 0x742   :  { %v1721_v41 = vsel %vm411_vm8, %v1715_v5, %v1719_v0  ;;  %v3884_v0 = vld [vmem:[%s4782_s7 + $0xc0] sm:$0xff]  }
 0x743   :  { %3659 = vmatmul.mubr.msk.f32.vlgmr.msra.gmra.mxu0 %vm522_vm9, %v1721_v41  ;;  %vm2546_vm9 = vsmask.f32 4352 }
 0x744   :  { %3676 = vmatpush3.bf16.msra.mxu0 %v3862_v21 }
 0x745   :  { %3677 = vmatprep.subr.bf16.mxu0 %v3863_v37 }
 0x748   :  { %3678 = vmatpush3.bf16.msra.mxu0 %v3863_v37  ;;  %v3885_v37 = vld [vmem:[%s4782_s7 + $0xd8] sm:$0xff]  }
 0x749   :  { %3679 = vmatprep.subr.bf16.mxu0 %v3865_v42 }
 0x74c   :  { %3680 = vmatpush3.bf16.msra.mxu0 %v3865_v42 }
 0x74d   :  { %3681 = vmatprep.subr.bf16.mxu0 %v3867_v53 }
 0x750   :  { %3682 = vmatpush3.bf16.msra.mxu0 %v3867_v53  ;;  %v3887_v53 = vld [vmem:[%s4782_s7 + $0xd0] sm:$0xff]  }
 0x751   :  { %3683 = vmatprep.subr.bf16.mxu0 %v3869_v47 }
 0x754   :  { %3684 = vmatpush3.bf16.msra.mxu0 %v3869_v47  ;;  %v3888_v47 = vld [vmem:[%s4782_s7 + $0xb0] sm:$0xff]  }
 0x755   :  { %3703 = vmatprep.subr.bf16.mxu0 %v3871_v49 }
 0x803   :  { %v1801_v52 = vpop.f32.mrf.mxu0 }
 0x804   :  { %v4541_v55 = vrot.slane %v1801_v52, %v4214_v15  ;;  %v4550_v29 = vrot.slane %v1801_v52, %v4217_v16 }
 0x805   :  { %v3660_v56 = vpop.f32.mrf.mxu0 }
 0x806   :  { %v1809_v57 = vmul.f32 %v4541_v55, %v4465_v38  ;;  %v1810_v58 = vmul.f32 %v4541_v55, %v4473_v45  ;;  %v1811_v22 = vmul.f32 %v4541_v55, %v4471_v44  ;;  %v3873_v44 = vld [vmem:[%s4782_s7 + $0x90] sm:$0xff]   ;;  %v3890_v56 = vld [vmem:[%s4782_s7 + $0xa8] sm:$0xff]  }
 0x808   :  { %v1817_v28 = vadd.f32 %v4550_v29, %v1809_v57  ;;  %v4554_v59 = vadd.f32 %v4550_v29, %v1810_v58  ;;  %v1819_v15 = vadd.f32 %v4550_v29, %v1811_v22  ;;  %v3891_v57 = vld [vmem:[%s4782_s7 + $0x138] sm:$0xff]  }
 0x80a   :  { %v1821_v23 = vmax.f32 %v1817_v28, 0.0  ;;  %v1822_v60 = vmax.f32 %v4554_v59, 0.0  ;;  %v4558_v38 = vmax.f32 %v1819_v15, 0.0  ;;  %v1812_v28 = vmul.f32 %v4541_v55, %v4467_v39  ;;  %v3892_v15 = vld [vmem:[%s4782_s7 + $0xa0] sm:$0xff]   ;;  %v3894_v39 = vld [vmem:[%s4782_s7 + $0x110] sm:$0xff]  }
 0x80c   :  { %v4562_v45 = vpack.c.bf16 %v1822_v60, %v1821_v23  ;;  %v4566_v16 = vpack.c.bf16 %v4558_v38, %v4558_v38  ;;  %v3893_v23 = vld [vmem:[%s4782_s7 + $0x130] sm:$0xff]   ;;  %v1820_v55 = vadd.f32 %v4550_v29, %v1812_v28  ;;  %v3896_v29 = vld [vmem:[%s4782_s7 + $0x108] sm:$0xff]  }
 0x80e   :  { %3685 = vmatprep.mubr.msk.bf16.mxu0 %vm1585_vm5, %v4562_v45  ;;  %v4574_v61 = vshrl.u32 %v4562_v45, 16  ;;  %v4577_v62 = vshll.u32 %v4562_v45, 16  ;;  %v4580_v1 = vshll.u32 %v4566_v16, 16  ;;  %v4583_v2 = vshrl.u32 %v4566_v16, 16 }
 0x80f   :  { %3686 = vmatmul.mubr.msk.bf16.vlgmr.msra.gmra.mxu0 %vm1585_vm5, %v4566_v16  ;;  %v2039_v12 = vrot.slane %v4562_v45, 1  ;;  %v2040_v18 = vrot.slane %v4566_v16, 1  ;;  %v2243_v41 = vrot.slane %v4562_v45, 2  ;;  %v2244_v42 = vrot.slane %v4566_v16, 2 }
 0x810   :  { %3704 = vmatpush3.bf16.msra.mxu0 %v3871_v49  ;;  %v1853_v6 = vrot.slane %v4577_v62, 1  ;;  %v2139_v7 = vrot.slane %v4574_v61, 1  ;;  %v2140_v8 = vrot.slane %v4577_v62, 2  ;;  %v2142_v9 = vrot.slane %v4583_v2, 1 }
 0x811   :  { %3705 = vmatprep.subr.bf16.mxu0 %v3873_v44  ;;  %v2143_v10 = vrot.slane %v4580_v1, 2  ;;  %v1858_v14 = vrot.slane %v4580_v1, 1  ;;  %v2041_v25 = vsel %vm229_vm2, %v2039_v12, %v2040_v18  ;;  %v2343_v30 = vrot.slane %v4574_v61, 2 }
 0x812   :  { %v1854_v13 = vor.u32 %v1853_v6, %v4574_v61  ;;  %v2141_v17 = vor.u32 %v2140_v8, %v2139_v7  ;;  %v2344_v31 = vrot.slane %v4577_v62, 3  ;;  %v2346_v32 = vrot.slane %v4583_v2, 2  ;;  %v3899_v8 = vld [vmem:[%s4782_s7 + $0x118] sm:$0xff]  }
 0x813   :  { %v2144_v40 = vor.u32 %v2143_v10, %v2142_v9  ;;  %v2347_v33 = vrot.slane %v4580_v1, 3  ;;  %vm2342_vm2 = vsmask.f32 5376  ;;  %v2245_v54 = vsel %vm2242_vm7, %v2243_v41, %v2244_v42  ;;  %v3900_v10 = vld [vmem:[%s4782_s7 + $0xf8] sm:$0xff]  }
 0x814   :  { %3706 = vmatpush3.bf16.msra.mxu0 %v3873_v44  ;;  %v1859_v19 = vsel %vm59_vm1, %v1854_v13, %v1858_v14  ;;  %v2345_v63 = vor.u32 %v2344_v31, %v2343_v30  ;;  %v2547_v49 = vrot.slane %v4574_v61, 3  ;;  %v2548_v50 = vrot.slane %v4577_v62, 4  ;;  %v3895_v61 = vld [vmem:[%s4782_s7 + $0x128] sm:$0xff]   ;;  %v3911_v30 = vld [vmem:[%s4782_s7 + $0x140] sm:$0xff]  }
 0x815   :  { %3671 = vmatprep.mubr.msk.bf16.mxu1 %vm1585_vm5, %v1859_v19  ;;  %v2145_v21 = vsel %vm2138_vm0, %v2141_v17, %v2144_v40  ;;  %3707 = vmatprep.subr.bf16.mxu0 %v3875_v11  ;;  %v2348_v5 = vor.u32 %v2347_v33, %v2346_v32  ;;  %v2551_v52 = vrot.slane %v4580_v1, 4  ;;  %v2447_v62 = vrot.slane %v4562_v45, 3  ;;  %v3897_v45 = vld [vmem:[%s4782_s7 + $0x120] sm:$0xff]  }
 0x816   :  { %3713 = vmatprep.mubr.msk.bf16.mxu0 %vm1585_vm5, %v2145_v21  ;;  %3672 = vmatmul.mubr.msk.bf16.vlgmr.msra.gmra.mxu1 %vm1585_vm5, %v4583_v2  ;;  %v2549_v58 = vor.u32 %v2548_v50, %v2547_v49  ;;  %v2448_v1 = vrot.slane %v4566_v16, 3  ;;  %v2639_v6 = vpack.c.bf16 %v4558_v38, %v1822_v60  ;;  %v1824_v7 = vmax.f32 %v1820_v55, 0.0  ;;  %v3898_v60 = vld [vmem:[%s4782_s7 + $0x100] sm:$0xff]   ;;  %v3905_v21 = vld [vmem:[%s4782_s7 + $0x178] sm:$0xff]  }
 0x817   :  { %3690 = vmatpush3.bf16.msra.mxu1 %v3874_v51  ;;  %3699 = vmatprep.mubr.msk.bf16.mxu1 %vm1585_vm5, %v2041_v25  ;;  %v2349_v36 = vsel %vm2342_vm2, %v2345_v63, %v2348_v5  ;;  %v2550_v51 = vrot.slane %v4583_v2, 3  ;;  %v3903_v40 = vld [vmem:[%s4782_s7 + $0x180] sm:$0xff]   ;;  %v3906_v2 = vld [vmem:[%s4782_s7 + $0x158] sm:$0xff]   ;;  %v3908_v25 = vld [vmem:[%s4782_s7 + $0x150] sm:$0xff]  }
 0x818   :  { %3708 = vmatpush3.bf16.msra.mxu0 %v3875_v11  ;;  %3691 = vmatprep.subr.bf16.mxu1 %v3876_v20  ;;  %v2449_v16 = vsel %vm2446_vm10, %v2447_v62, %v2448_v1  ;;  %v2750_v59 = vshll.u32 %v2639_v6, 16  ;;  %v2640_v38 = vpack.c.bf16 %v1824_v7, %v1824_v7  ;;  %v3901_v11 = vld [vmem:[%s4782_s7 + $0x188] sm:$0xff]   ;;  %v2748_v12 = vshrl.u32 %v2639_v6, 16  ;;  %v3913_v33 = vld [vmem:[%s4784_s9] sm:$0xff]  }
 0x819   :  { %3709 = vmatprep.subr.bf16.mxu0 %v3877_v24  ;;  %v2552_v22 = vor.u32 %v2551_v52, %v2550_v51 }
 0x81a   :  { %v2754_v13 = vshll.u32 %v2640_v38, 16  ;;  %v2758_v31 = vshrl.u32 %v2640_v38, 16 }
 0x81b   :  { %3692 = vmatpush3.bf16.msra.mxu1 %v3876_v20  ;;  %v2553_v44 = vsel %vm2546_vm9, %v2549_v58, %v2552_v22  ;;  %v3904_v20 = vld [vmem:[%s4782_s7 + $0x160] sm:$0xff]  }
 0x81c   :  { %3710 = vmatpush3.bf16.msra.mxu0 %v3877_v24  ;;  %3693 = vmatprep.subr.bf16.mxu1 %v3878_v26  ;;  %v2756_v17 = vrot.slane %v2754_v13, 1  ;;  %v3907_v24 = vld [vmem:[%s4782_s7 + $0x170] sm:$0xff]  }
 0x81d   :  { %3711 = vmatprep.subr.bf16.mxu0 %v3879_v46 }
 0x81f   :  { %3694 = vmatpush3.bf16.msra.mxu1 %v3878_v26  ;;  %v3909_v26 = vld [vmem:[%s4782_s7 + $0x168] sm:$0xff]  }
 0x820   :  { %3712 = vmatpush3.bf16.msra.mxu0 %v3879_v46  ;;  %3695 = vmatprep.subr.bf16.mxu1 %v3880_v34  ;;  %v3910_v46 = vld [vmem:[%s4782_s7 + $0x148] sm:$0xff]  }
 0x821   :  { %3731 = vmatprep.subr.bf16.mxu0 %v3881_v35 }
 0x823   :  { %3696 = vmatpush3.bf16.msra.mxu1 %v3880_v34  ;;  %3714 = vmatmul.mubr.msk.bf16.vlgmr.msra.gmra.mxu0 %vm1585_vm5, %v2142_v9  ;;  %v2752_v9 = vrot.slane %v2750_v59, 1 }
 0x824   :  { %3732 = vmatpush3.bf16.msra.mxu0 %v3881_v35  ;;  %3741 = vmatprep.mubr.msk.bf16.mxu0 %vm1585_vm5, %v2349_v36 }
 0x825   :  { %3697 = vmatprep.subr.bf16.mxu1 %v3882_v4  ;;  %3733 = vmatprep.subr.bf16.mxu0 %v3883_v3  ;;  %v2753_v14 = vor.u32 %v2752_v9, %v2748_v12 }
 0x827   :  { %3698 = vmatpush3.bf16.msra.mxu1 %v3882_v4  ;;  %v2757_v19 = vsel %vm59_vm1, %v2753_v14, %v2756_v17  ;;  %vm2882_vm1 = vcmask 261120  }
 0x828   :  { %3734 = vmatpush3.bf16.msra.mxu0 %v3883_v3  ;;  %3717 = vmatprep.subr.bf16.mxu1 %v3884_v0 }
 0x829   :  { %3735 = vmatprep.subr.bf16.mxu0 %v3885_v37 }
 0x82a   :  { %3700 = vmatmul.mubr.msk.bf16.vlgmr.msra.gmra.mxu1 %vm1585_vm5, %v2040_v18  ;;  %v3902_v18 = vld [vmem:[%s4782_s7 + $0xf0] sm:$0xff]  }
 0x82b   :  { %3718 = vmatpush3.bf16.msra.mxu1 %v3884_v0  ;;  %3727 = vmatprep.mubr.msk.bf16.mxu1 %vm1585_vm5, %v2245_v54 }
 0x82c   :  { %3736 = vmatpush3.bf16.msra.mxu0 %v3885_v37  ;;  %3719 = vmatprep.subr.bf16.mxu1 %v3886_v43 }
 0x82d   :  { %3737 = vmatprep.subr.bf16.mxu0 %v3887_v53 }
 0x82f   :  { %3720 = vmatpush3.bf16.msra.mxu1 %v3886_v43 }
 0x830   :  { %3738 = vmatpush3.bf16.msra.mxu0 %v3887_v53  ;;  %3721 = vmatprep.subr.bf16.mxu1 %v3888_v47 }
 0x831   :  { %3739 = vmatprep.subr.bf16.mxu0 %v3889_v48 }
 0x833   :  { %3722 = vmatpush3.bf16.msra.mxu1 %v3888_v47 }
 0x834   :  { %3740 = vmatpush3.bf16.msra.mxu0 %v3889_v48  ;;  %3723 = vmatprep.subr.bf16.mxu1 %v3890_v56 }
 0x835   :  { %3759 = vmatprep.subr.bf16.mxu0 %v3891_v57 }
 0x837   :  { %3724 = vmatpush3.bf16.msra.mxu1 %v3890_v56  ;;  %3742 = vmatmul.mubr.msk.bf16.vlgmr.msra.gmra.mxu0 %vm1585_vm5, %v2346_v32  ;;  %v3912_v32 = vld [vmem:[%s4784_s9 + $0x8] sm:$0xff]  }
 0x838   :  { %3760 = vmatpush3.bf16.msra.mxu0 %v3891_v57  ;;  %3769 = vmatprep.mubr.msk.bf16.mxu0 %vm1585_vm5, %v2553_v44 }
 0x839   :  { %3725 = vmatprep.subr.bf16.mxu1 %v3892_v15  ;;  %3761 = vmatprep.subr.bf16.mxu0 %v3893_v23 }
 0x83b   :  { %3726 = vmatpush3.bf16.msra.mxu1 %v3892_v15 }
 0x83c   :  { %3762 = vmatpush3.bf16.msra.mxu0 %v3893_v23  ;;  %3745 = vmatprep.subr.bf16.mxu1 %v3894_v39 }
 0x83d   :  { %3763 = vmatprep.subr.bf16.mxu0 %v3895_v61 }
 0x83e   :  { %3728 = vmatmul.mubr.msk.bf16.vlgmr.msra.gmra.mxu1 %vm1585_vm5, %v2244_v42 }
 0x83f   :  { %3746 = vmatpush3.bf16.msra.mxu1 %v3894_v39  ;;  %3755 = vmatprep.mubr.msk.bf16.mxu1 %vm1585_vm5, %v2449_v16 }
 0x840   :  { %3764 = vmatpush3.bf16.msra.mxu0 %v3895_v61  ;;  %3747 = vmatprep.subr.bf16.mxu1 %v3896_v29 }
 0x841   :  { %3765 = vmatprep.subr.bf16.mxu0 %v3897_v45 }
 0x843   :  { %3748 = vmatpush3.bf16.msra.mxu1 %v3896_v29 }
 0x844   :  { %3766 = vmatpush3.bf16.msra.mxu0 %v3897_v45  ;;  %3749 = vmatprep.subr.bf16.mxu1 %v3898_v60 }
 0x845   :  { %3767 = vmatprep.subr.bf16.mxu0 %v3899_v8 }
 0x847   :  { %3750 = vmatpush3.bf16.msra.mxu1 %v3898_v60 }
 0x848   :  { %3768 = vmatpush3.bf16.msra.mxu0 %v3899_v8  ;;  %3751 = vmatprep.subr.bf16.mxu1 %v3900_v10 }
 0x849   :  { %3787 = vmatprep.subr.bf16.mxu0 %v3901_v11 }
 0x84b   :  { %3752 = vmatpush3.bf16.msra.mxu1 %v3900_v10  ;;  %3770 = vmatmul.mubr.msk.bf16.vlgmr.msra.gmra.mxu0 %vm1585_vm5, %v2550_v51 }
 0x84c   :  { %3788 = vmatpush3.bf16.msra.mxu0 %v3901_v11  ;;  %3797 = vmatprep.mubr.msk.bf16.mxu0 %vm1585_vm5, %v2757_v19 }
 0x84d   :  { %3753 = vmatprep.subr.bf16.mxu1 %v3902_v18  ;;  %3789 = vmatprep.subr.bf16.mxu0 %v3903_v40 }
 0x84f   :  { %3754 = vmatpush3.bf16.msra.mxu1 %v3902_v18 }
 0x850   :  { %3790 = vmatpush3.bf16.msra.mxu0 %v3903_v40  ;;  %3773 = vmatprep.subr.bf16.mxu1 %v3904_v20 }
 0x851   :  { %3791 = vmatprep.subr.bf16.mxu0 %v3905_v21 }
 0x852   :  { %3756 = vmatmul.mubr.msk.bf16.vlgmr.msra.gmra.mxu1 %vm1585_vm5, %v2448_v1 }
 0x853   :  { %3774 = vmatpush3.bf16.msra.mxu1 %v3904_v20  ;;  %3783 = vmatprep.mubr.msk.bf16.mxu1 %vm1585_vm5, %v2639_v6 }
 0x854   :  { %3792 = vmatpush3.bf16.msra.mxu0 %v3905_v21  ;;  %3775 = vmatprep.subr.bf16.mxu1 %v3906_v2 }
 0x855   :  { %3793 = vmatprep.subr.bf16.mxu0 %v3907_v24 }
 0x857   :  { %3776 = vmatpush3.bf16.msra.mxu1 %v3906_v2 }
 0x858   :  { %3794 = vmatpush3.bf16.msra.mxu0 %v3907_v24  ;;  %3777 = vmatprep.subr.bf16.mxu1 %v3908_v25 }
 0x859   :  { %3795 = vmatprep.subr.bf16.mxu0 %v3909_v26 }
 0x85b   :  { %3778 = vmatpush3.bf16.msra.mxu1 %v3908_v25 }
 0x85c   :  { %3796 = vmatpush3.bf16.msra.mxu0 %v3909_v26  ;;  %3779 = vmatprep.subr.bf16.mxu1 %v3910_v46  ;;  %v3244_v26 = vld [vmem:[%s4783_s8] ss:$0 sm:$0xff]  ;;  %s3920_s8 = scalar_lea.vmem %s2935_s0, 32 }
 0x85d   :  { %p3921_p0 = scmp.ne.s32.totalorder %s2935_s0, %s3920_s8  ;;  %p3926_p2 = scmp.lt.s32.totalorder %s3920_s8, %s3920_s8 }
 0x85f   :  { %3780 = vmatpush3.bf16.msra.mxu1 %v3910_v46  ;;  %3798 = vmatmul.mubr.msk.bf16.vlgmr.msra.gmra.mxu0 %vm1585_vm5, %v2758_v31  ;;  %p3927_p3 = por %p3926_p2, %p3925_p1 }
 0x860   :  { %3781 = vmatprep.subr.bf16.mxu1 %v3911_v30 }
 0x861   :  { %p3928_p4 = pnand %p3927_p3, %p3921_p0 }
 0x863   :  { %3782 = vmatpush3.bf16.msra.mxu1 %v3911_v30 }
 0x864   :  { %3801 = vmatprep.subr.bf16.mxu1 %v3942_v27 }
 0x866   :  { %3784 = vmatmul.mubr.msk.bf16.vlgmr.msra.gmra.mxu1 %vm1585_vm5, %v2640_v38 }
 0x867   :  { %3805 = vmatprep.mubr.msk.bf16.mxu1 %vm3943_vm3, %v3942_v27  ;;  %3802 = vmatpush3.bf16.msra.mxu1 %v3912_v32  ;;  %vm2926_vm3 = vcmask 25600  }
 0x868   :  { %3803 = vmatprep.subr.bf16.mxu1 %v3942_v27 }
 0x86b   :  { %3804 = vmatpush3.bf16.msra.mxu1 %v3913_v33 }
 0x8cf   :  { %v3687_v34 = vpop.f32.mrf.mxu0 }
 0x8d1   :  { %v2013_v35 = vpop.f32.mrf.mxu0 }
 0x8d3   :  { %v3688_v63 = vpop.f32.mrf.mxu0 }
 0x8d5   :  { %v2016_v5 = vpop.f32.mrf.mxu0 }
 0x8d6   :  { %v3673_v4 = vpop.f32.mrf.mxu1 }
 0x8d7   :  { %v2021_v3 = vadd.f32 %v3687_v34, %v3673_v4  ;;  %v3245_v34 = vld [vmem:[%s4785_s10] ss:$0 sm:$0xff] }
 0x8d8   :  { %v1932_v36 = vpop.f32.mrf.mxu1 }
 0x8d9   :  { %v2014_v0 = vadd.f32 %v2013_v35, %v1932_v36 }
 0x8da   :  { %v3674_v37 = vpop.f32.mrf.mxu1 }
 0x8dc   :  { %v1935_v41 = vpop.f32.mrf.mxu1 }
 0x8e3   :  { %v3715_v42 = vpop.f32.mrf.mxu0 }
 0x8e5   :  { %v2216_v43 = vpop.f32.mrf.mxu0 }
 0x8e7   :  { %v3716_v53 = vpop.f32.mrf.mxu0 }
 0x8e9   :  { %v2219_v54 = vpop.f32.mrf.mxu0 }
 0x8ea   :  { %v3701_v47 = vpop.f32.mrf.mxu1 }
 0x8eb   :  { %v2126_v62 = vadd.f32 %v3701_v47, %v2021_v3 }
 0x8ec   :  { %v2112_v48 = vpop.f32.mrf.mxu1 }
 0x8ed   :  { %v2125_v6 = vadd.f32 %v2112_v48, %v2014_v0  ;;  %v2230_v7 = vadd.f32 %v3715_v42, %v2126_v62 }
 0x8ee   :  { %v3702_v49 = vpop.f32.mrf.mxu1 }
 0x8ef   :  { %v2229_v16 = vadd.f32 %v2216_v43, %v2125_v6 }
 0x8f0   :  { %v2115_v50 = vpop.f32.mrf.mxu1 }
 0x8f7   :  { %v3743_v27 = vpop.f32.mrf.mxu0 }
 0x8f9   :  { %v2420_v51 = vpop.f32.mrf.mxu0 }
 0x8fb   :  { %v3744_v52 = vpop.f32.mrf.mxu0 }
 0x8fd   :  { %v2423_v56 = vpop.f32.mrf.mxu0 }
 0x8fe   :  { %v3729_v57 = vpop.f32.mrf.mxu1 }
 0x8ff   :  { %v2330_v45 = vadd.f32 %v3729_v57, %v2230_v7 }
 0x900   :  { %v2316_v58 = vpop.f32.mrf.mxu1 }
 0x901   :  { %v2329_v59 = vadd.f32 %v2316_v58, %v2229_v16  ;;  %v2434_v60 = vadd.f32 %v3743_v27, %v2330_v45 }
 0x902   :  { %v3730_v22 = vpop.f32.mrf.mxu1 }
 0x903   :  { %v2433_v9 = vadd.f32 %v2420_v51, %v2329_v59 }
 0x904   :  { %v2319_v28 = vpop.f32.mrf.mxu1 }
 0x90b   :  { %v3771_v15 = vpop.f32.mrf.mxu0 }
 0x90d   :  { %v2624_v23 = vpop.f32.mrf.mxu0 }
 0x90f   :  { %v3772_v44 = vpop.f32.mrf.mxu0 }
 0x911   :  { %v2627_v39 = vpop.f32.mrf.mxu0 }
 0x912   :  { %v3757_v55 = vpop.f32.mrf.mxu1 }
 0x913   :  { %v2534_v8 = vadd.f32 %v3757_v55, %v2434_v60 }
 0x914   :  { %v2520_v61 = vpop.f32.mrf.mxu1 }
 0x915   :  { %v2533_v11 = vadd.f32 %v2520_v61, %v2433_v9  ;;  %v2638_v14 = vadd.f32 %v3771_v15, %v2534_v8 }
 0x916   :  { %v3758_v1 = vpop.f32.mrf.mxu1 }
 0x917   :  { %v2637_v40 = vadd.f32 %v2624_v23, %v2533_v11 }
 0x918   :  { %v2523_v29 = vpop.f32.mrf.mxu1 }
 0x91f   :  { %v3799_v38 = vpop.f32.mrf.mxu0 }
 0x921   :  { %v2830_v10 = vpop.f32.mrf.mxu0 }
 0x923   :  { %v3800_v12 = vpop.f32.mrf.mxu0 }
 0x925   :  { %v2833_v13 = vpop.f32.mrf.mxu0 }
 0x926   :  { %v3785_v17 = vpop.f32.mrf.mxu1 }
 0x927   :  { %v2736_v18 = vadd.f32 %v3785_v17, %v2638_v14 }
 0x928   :  { %v2722_v19 = vpop.f32.mrf.mxu1 }
 0x929   :  { %v2844_v20 = vadd.f32 %v3799_v38, %v2736_v18  ;;  %v2735_v21 = vadd.f32 %v2722_v19, %v2637_v40 }
 0x92a   :  { %v3786_v2 = vpop.f32.mrf.mxu1 }
 0x92b   :  { %v2846_v24 = vrot.slane %v2844_v20, 7  ;;  %v2843_v25 = vadd.f32 %v2830_v10, %v2735_v21 }
 0x92c   :  { %v2725_v46 = vpop.f32.mrf.mxu1 }
 0x92d   :  { %v2848_v30 = vsel %vm411_vm8, %v2843_v25, %v2846_v24 }
 0x92e   :  { %v2856_v31 = vadd.f32 %v3244_v26, %v2848_v30 }
 0x930   :  { %v2857_v32 = vmax.f32 %v2856_v31, 0.0 }
 0x932   :  { %v2858_v33 = vpack.c.bf16 %v2857_v32, %v2857_v32 }
 0x934   :  { %3806 = vmatmul.mubr.msk.bf16.vlgmr.msra.gmra.mxu1 %vm2882_vm1, %v2858_v33 }
 0x9f4   :  { %v2920_v35 = vpop.f32.mrf.mxu1 }
 0x9f5   :  { %v2921_v63 = vadd.f32 %v3245_v34, %v2920_v35 }
 0x9f6   :  { %v3807_v5 = vpop.f32.mrf.mxu1 }
 0x9f7   :  { %2927 = vst.msk [vmem:[#allocation2] sm:$0x3] %vm2926_vm3, %v2921_v63 }
 0x9f8   :  { %v2923_v4 = vpop.f32.mrf.mxu1 }
 0x9f9   :  { %3931 = shalt.err (!%p3928_p4)
}
 0x9fa   :  { %2937 = dma.vmem_to_hbm [thread:$0]  %s2935_s0, 32, %s4786_s11, [#allocation3]   ;;  %v3808_v3 = vpop.f32.mrf.mxu1 }
 0x9fb   :  { %3940 = dma.done.wait [#allocation3], 32  }
 0x9fc   :  { %3941 = vsyncadd [#allocation3], 4294967264 }
 0x9fd   :  { %2941 = vsyncpa [#allocation3], 1 }

</bundles_post_ra>
